<compile_context>
chip_gen: v7x
topology: tpu7x:2x2x1
jax: 0.10.0
libtpu: 0.0.40
codegen_flags: <defaults>
</compile_context>

<pallas_src>
import math
import jax
import jax.numpy as jnp
from jax.experimental import pallas as pl
from jax.experimental.pallas import tpu as pltpu


# ----------------------------- Pallas kernel --------------------------------
def bottle2neck_kernel(x_ref, w1_ref, b1_ref, wb_ref, bb_ref, w3_ref, b3_ref,
                       out_ref, pad_ref):
    MB, WCin = x_ref.shape                    # rows = NB*H, lanes = W*Cin
    WCw = wb_ref.shape[1]                     # lanes per scale-group = W*width
    scale = w3_ref.shape[0]
    nums = wb_ref.shape[0] // 3
    NB, Hp2, _ = pad_ref.shape
    H = Hp2 - 2

    x = x_ref[...]                            # (MB, W*Cin) f32, kept for residual
    xb = x.astype(jnp.bfloat16)

    # --- conv1 (1x1, all groups in ONE banded matmul) + bn1 bias + relu ---
    out1_all = jnp.dot(xb, w1_ref[...], preferred_element_type=jnp.float32)
    out1_all = jnp.maximum(out1_all + b1_ref[...], 0.0)      # (MB, scale*W*Cw)
    out1 = [out1_all[:, g * WCw:(g + 1) * WCw] for g in range(scale)]

    # Zero the vertically padded scratch once; rows 0 and H+1 stay zero while
    # the interior is fully rewritten by every branch.
    pad_ref[...] = jnp.zeros_like(pad_ref)

    # Pass-through group's conv3 contribution (stype='normal', scale != 1).
    out3 = jnp.dot(out1[scale - 1].astype(jnp.bfloat16), w3_ref[scale - 1],
                   preferred_element_type=jnp.float32)        # (MB, W*Cout) f32

    # --- hierarchical 3x3 branches: 3 banded matmuls (one per ky) each ---
    sp_out = None
    for i in range(nums):
        sp = out1[i] if i == 0 else sp_out + out1[i]          # (MB, W*Cw) f32
        pad_ref[:, 1:H + 1, :] = sp.reshape(NB, H, WCw)
        conv = None
        for ky in range(3):
            lhs = pad_ref[:, ky:ky + H, :].reshape(MB, WCw).astype(jnp.bfloat16)
            part = jnp.dot(lhs, wb_ref[3 * i + ky],
                           preferred_element_type=jnp.float32)
            conv = part if ky == 0 else conv + part
        sp_out = jnp.maximum(conv + bb_ref[i], 0.0)           # (MB, W*Cw) f32
        # conv3 partial for this group, interleaved with branch compute
        out3 = out3 + jnp.dot(sp_out.astype(jnp.bfloat16), w3_ref[i],
                              preferred_element_type=jnp.float32)

    # --- bn3 bias, identity residual, relu, lane-dense store ---
    out_ref[...] = jnp.maximum(out3 + b3_ref[...] + x, 0.0).astype(out_ref.dtype)


# ------------------------------- wrapper -------------------------------------
def fold_bn(gamma, beta, mean, var, eps=1e-5):
    s = gamma / jnp.sqrt(var + eps)
    return s, beta - mean * s


def _pick_batch_block(n, per_image_bytes, budget=4 << 20):
    nb = max(1, min(n, budget // max(per_image_bytes, 1)))
    while n % nb:
        nb -= 1
    return nb


def bottle2neck_forward(x_nchw, p):
    """x_nchw: (N, inplanes, H, W) float32.  Returns (N, planes*4, H, W)."""
    N, Cin, H, W = x_nchw.shape

    bn1s, bn1b = fold_bn(*p["bn1"])
    bn3s, bn3b = fold_bn(*p["bn3"])
    bnbs, bnbb = fold_bn(*p["bnb"])                           # (nums, Cw)

    nums, Cw = p["wb"].shape[0], p["wb"].shape[1]
    Cws = p["w1"].shape[0]
    scale = Cws // Cw
    Cout = p["w3"].shape[0]
    assert scale != 1, "scale == 1 path not implemented"
    assert Cin == Cout, "identity residual requires inplanes == planes*expansion"

    WCin, WCw, WCout = W * Cin, W * Cw, W * Cout
    eyeW = jnp.eye(W, dtype=jnp.float32)

    # conv1: (Cws, Cin, 1, 1) -> (Cin, Cws), fold BN1 scale, then banded
    # (W*Cin, scale*W*Cw) with group-major columns so each group is a
    # contiguous lane slab of the matmul output.
    w1d = jnp.transpose(p["w1"][:, :, 0, 0], (1, 0)) * bn1s[None, :]
    w1g = w1d.reshape(Cin, scale, Cw)
    w1band = jnp.einsum("wv,igc->wigvc", eyeW, w1g).reshape(
        WCin, scale * WCw).astype(jnp.bfloat16)
    b1m = jnp.broadcast_to(bn1b.reshape(scale, 1, Cw),
                           (scale, W, Cw)).reshape(1, scale * WCw)

    # branch 3x3 convs: OIHW (nums, O, I, 3, 3) -> (nums, ky, kx, I, O) with BN
    # scale folded on O, then per (branch, ky) a banded (W*Cw, W*Cw) matrix
    # realising the kx taps (horizontal zero padding is implicit in the band).
    wbf = jnp.transpose(p["wb"], (0, 3, 4, 2, 1)) * bnbs[:, None, None, None, :]
    shift = jnp.stack([jnp.eye(W, k=1 - kx, dtype=jnp.float32)
                       for kx in range(3)])                   # (kx, x, w)
    wbband = jnp.einsum("axw,nyaio->nyxiwo", shift, wbf).reshape(
        nums * 3, WCw, WCw).astype(jnp.bfloat16)
    bbm = jnp.broadcast_to(bnbb[:, None, None, :],
                           (nums, 1, W, Cw)).reshape(nums, 1, WCw)

    # conv3: (Cout, Cws, 1, 1) -> (Cws, Cout), fold BN3 scale, banded per group.
    w3d = jnp.transpose(p["w3"][:, :, 0, 0], (1, 0)) * bn3s[None, :]
    w3band = jnp.einsum("wv,gco->gwcvo", eyeW,
                        w3d.reshape(scale, Cw, Cout)).reshape(
        scale, WCw, WCout).astype(jnp.bfloat16)
    b3m = jnp.broadcast_to(bn3b[None, :], (W, Cout)).reshape(1, WCout)

    # NCHW -> merged-lane (N*H, W*Cin) layout (metadata-only reshape in HBM).
    x2d = jnp.transpose(x_nchw, (0, 2, 3, 1)).reshape(N * H, WCin)

    NB = _pick_batch_block(N, H * W * (Cin + Cout) * 4 * 2)
    MB = NB * H
    grid = (N // NB,)

    def _const_spec(arr):
        zeros = (0,) * arr.ndim
        return pl.BlockSpec(arr.shape, lambda i, _z=zeros: _z)

    grid_spec = pltpu.PrefetchScalarGridSpec(
        num_scalar_prefetch=0,
        grid=grid,
        in_specs=[
            pl.BlockSpec((MB, WCin), lambda i: (i, 0)),
            _const_spec(w1band), _const_spec(b1m),
            _const_spec(wbband), _const_spec(bbm),
            _const_spec(w3band), _const_spec(b3m),
        ],
        out_specs=pl.BlockSpec((MB, WCout), lambda i: (i, 0)),
        scratch_shapes=[pltpu.VMEM((NB, H + 2, WCw), jnp.float32)],
    )

    out = pl.pallas_call(
        bottle2neck_kernel,
        out_shape=jax.ShapeDtypeStruct((N * H, WCout), jnp.float32),
        grid_spec=grid_spec,
        compiler_params=pltpu.CompilerParams(
            dimension_semantics=("parallel",),
            vmem_limit_bytes=32 * 1024 * 1024),
    )(x2d, w1band, b1m, wbband, bbm, w3band, b3m)

    out_nhwc = out.reshape(N, H, W, Cout)
    return jnp.transpose(out_nhwc, (0, 3, 1, 2))              # NHWC -> NCHW


# --------------------------- pure-JAX reference -------------------------------
def reference_forward(x, p, scale, nums):
    dn = ("NCHW", "OIHW", "NCHW")

    def conv(x, w, pad):
        return jax.lax.conv_general_dilated(x, w, (1, 1), pad, dimension_numbers=dn)

    def bn(x, stats):
        s, b = fold_bn(*stats)
        return x * s[None, :, None, None] + b[None, :, None, None]

    out = jax.nn.relu(bn(conv(x, p["w1"], "VALID"), p["bn1"]))
    width = p["wb"].shape[1]
    spx = [out[:, i * width:(i + 1) * width] for i in range(scale)]
    outs = []
    sp = None
    for i in range(nums):
        sp = spx[i] if i == 0 else sp + spx[i]
        sp = conv(sp, p["wb"][i], ((1, 1), (1, 1)))
        stats_i = tuple(t[i] for t in p["bnb"])
        sp = jax.nn.relu(bn(sp, stats_i))
        outs.append(sp)
    outs.append(spx[nums])
    out = jnp.concatenate(outs, axis=1)
    out = bn(conv(out, p["w3"], "VALID"), p["bn3"])
    return jax.nn.relu(out + x)


# ---------------------------------- main --------------------------------------
if __name__ == "__main__":
    # Module config (defaults of Bottle2neck)
    planes, baseWidth, scale, expansion = 16, 26, 4, 4
    inplanes = planes * expansion                 # identity residual requires this
    width = int(math.floor(planes * (baseWidth / 64.0)))   # = 6
    nums = scale - 1                               # = 3
    N, H, W = 2, 8, 8

    key = jax.random.PRNGKey(0)
    ks = jax.random.split(key, 16)

    def bn_params(k, c):
        k1, k2, k3, k4 = jax.random.split(k, 4)
        gamma = jax.random.uniform(k1, (c,), jnp.float32, 0.5, 1.5)
        beta = 0.1 * jax.random.normal(k2, (c,), jnp.float32)
        mean = 0.1 * jax.random.normal(k3, (c,), jnp.float32)
        var = jax.random.uniform(k4, (c,), jnp.float32, 0.5, 1.5)
        return gamma, beta, mean, var

    def bn_params_stacked(k, n, c):
        keys = jax.random.split(k, n)
        stats = [bn_params(kk, c) for kk in keys]
        return tuple(jnp.stack([s[j] for s in stats]) for j in range(4))

    params = {
        "w1": 0.1 * jax.random.normal(ks[0], (width * scale, inplanes, 1, 1), jnp.float32),
        "bn1": bn_params(ks[1], width * scale),
        "wb": 0.1 * jax.random.normal(ks[2], (nums, width, width, 3, 3), jnp.float32),
        "bnb": bn_params_stacked(ks[3], nums, width),
        "w3": 0.1 * jax.random.normal(ks[4], (planes * expansion, width * scale, 1, 1), jnp.float32),
        "bn3": bn_params(ks[5], planes * expansion),
    }

    x = jax.random.normal(ks[6], (N, inplanes, H, W), jnp.float32)

    out = bottle2neck_forward(x, params)
    out = jax.block_until_ready(out)

    ref = jax.block_until_ready(reference_forward(x, params, scale, nums))
    assert out.shape == ref.shape == (N, planes * expansion, H, W)
    # bf16 MXU operands (f32 accumulation) -> slightly looser tolerance than an
    # all-f32 variant; still far below the magnitude of any structural error.
    err = float(jnp.max(jnp.abs(out - ref)))
    assert jnp.allclose(out, ref, rtol=2e-2, atol=2e-2), err

    print("KERNEL_OK")
</pallas_src>

<mosaic_0001>
module attributes {stable_mosaic.version = 11 : i64} {
  func.func @bottle2neck_kernel(%arg0: i32, %arg1: memref<16x512xf32, #tpu.memory_space<vmem>>, %arg2: memref<512x192xbf16, #tpu.memory_space<vmem>>, %arg3: memref<1x192xf32, #tpu.memory_space<vmem>>, %arg4: memref<9x48x48xbf16, #tpu.memory_space<vmem>>, %arg5: memref<3x1x48xf32, #tpu.memory_space<vmem>>, %arg6: memref<4x48x512xbf16, #tpu.memory_space<vmem>>, %arg7: memref<1x512xf32, #tpu.memory_space<vmem>>, %arg8: memref<16x512xf32, #tpu.memory_space<vmem>>, %arg9: memref<2x10x48xf32, #tpu.memory_space<vmem>>) attributes {dimension_semantics = [#tpu.dimension_semantics<parallel>], iteration_bounds = array<i64: 1>, scalar_prefetch = 0 : i64, scratch_operands = 1 : i64, tpu.core_type = #tpu.core_type<tc>, window_params = [{transform_indices = @transform_0, window_bounds = array<i64: 16, 512>}, {pipeline_mode = #tpu.pipeline_mode<synchronous>, transform_indices = @transform_1, window_bounds = array<i64: 512, 192>}, {pipeline_mode = #tpu.pipeline_mode<synchronous>, transform_indices = @transform_2, window_bounds = array<i64: 1, 192>}, {pipeline_mode = #tpu.pipeline_mode<synchronous>, transform_indices = @transform_3, window_bounds = array<i64: 9, 48, 48>}, {pipeline_mode = #tpu.pipeline_mode<synchronous>, transform_indices = @transform_4, window_bounds = array<i64: 3, 1, 48>}, {pipeline_mode = #tpu.pipeline_mode<synchronous>, transform_indices = @transform_5, window_bounds = array<i64: 4, 48, 512>}, {pipeline_mode = #tpu.pipeline_mode<synchronous>, transform_indices = @transform_6, window_bounds = array<i64: 1, 512>}, {transform_indices = @transform_7, window_bounds = array<i64: 16, 512>}]} {
    %c0 = arith.constant 0 : index
    %c0_0 = arith.constant 0 : index
    %0 = vector.load %arg1[%c0, %c0_0] : memref<16x512xf32, #tpu.memory_space<vmem>>, vector<16x512xf32>
    %1 = arith.truncf %0 : vector<16x512xf32> to vector<16x512xbf16>
    %c0_1 = arith.constant 0 : index
    %c0_2 = arith.constant 0 : index
    %2 = vector.load %arg2[%c0_1, %c0_2] : memref<512x192xbf16, #tpu.memory_space<vmem>>, vector<512x192xbf16>
    %cst = arith.constant dense<0.000000e+00> : vector<16x192xf32>
    %3 = tpu.matmul %1, %2, %cst {dimension_numbers = #tpu.dot_dimension_numbers<[1], [0], [0], [1], [0, 0, 1, 1], [], []>} : vector<16x512xbf16>, vector<512x192xbf16>, vector<16x192xf32> -> vector<16x192xf32>
    %c0_3 = arith.constant 0 : index
    %c0_4 = arith.constant 0 : index
    %4 = vector.load %arg3[%c0_3, %c0_4] : memref<1x192xf32, #tpu.memory_space<vmem>>, vector<1x192xf32>
    %5 = vector.broadcast %4 : vector<1x192xf32> to vector<16x192xf32>
    %6 = arith.addf %3, %5 : vector<16x192xf32>
    %cst_5 = arith.constant 0.000000e+00 : f32
    %7 = vector.broadcast %cst_5 : f32 to vector<16x192xf32>
    %8 = arith.maximumf %6, %7 : vector<16x192xf32>
    %9 = vector.extract_strided_slice %8 {offsets = [0, 0], sizes = [16, 48], strides = [1, 1]} : vector<16x192xf32> to vector<16x48xf32>
    %10 = vector.extract_strided_slice %8 {offsets = [0, 48], sizes = [16, 48], strides = [1, 1]} : vector<16x192xf32> to vector<16x48xf32>
    %11 = vector.extract_strided_slice %8 {offsets = [0, 96], sizes = [16, 48], strides = [1, 1]} : vector<16x192xf32> to vector<16x48xf32>
    %12 = vector.extract_strided_slice %8 {offsets = [0, 144], sizes = [16, 48], strides = [1, 1]} : vector<16x192xf32> to vector<16x48xf32>
    %cst_6 = arith.constant 0.000000e+00 : f32
    %13 = vector.broadcast %cst_6 : f32 to vector<2x10x48xf32>
    %c0_7 = arith.constant 0 : index
    %c0_8 = arith.constant 0 : index
    %c0_9 = arith.constant 0 : index
    %14 = vector.load %arg9[%c0_7, %c0_8, %c0_9] : memref<2x10x48xf32, #tpu.memory_space<vmem>>, vector<2x10x48xf32>
    tpu.vector_store %arg9[%c0_7, %c0_8, %c0_9], %13 {strides = array<i32>} : memref<2x10x48xf32, #tpu.memory_space<vmem>>, vector<2x10x48xf32>,
    %15 = arith.truncf %12 : vector<16x48xf32> to vector<16x48xbf16>
    %c3 = arith.constant 3 : index
    %c0_10 = arith.constant 0 : index
    %c0_11 = arith.constant 0 : index
    %16 = vector.load %arg6[%c3, %c0_10, %c0_11] : memref<4x48x512xbf16, #tpu.memory_space<vmem>>, vector<1x48x512xbf16>
    %17 = vector.shape_cast %16 : vector<1x48x512xbf16> to vector<48x512xbf16>
    %cst_12 = arith.constant dense<0.000000e+00> : vector<16x512xf32>
    %18 = tpu.matmul %15, %17, %cst_12 {dimension_numbers = #tpu.dot_dimension_numbers<[1], [0], [0], [1], [0, 0, 1, 1], [], []>} : vector<16x48xbf16>, vector<48x512xbf16>, vector<16x512xf32> -> vector<16x512xf32>
    %19 = vector.shape_cast %9 : vector<16x48xf32> to vector<2x8x48xf32>
    %c0_13 = arith.constant 0 : index
    %c1 = arith.constant 1 : index
    %c0_14 = arith.constant 0 : index
    %20 = vector.load %arg9[%c0_13, %c1, %c0_14] : memref<2x10x48xf32, #tpu.memory_space<vmem>>, vector<2x8x48xf32>
    tpu.vector_store %arg9[%c0_13, %c1, %c0_14], %19 {strides = array<i32>} : memref<2x10x48xf32, #tpu.memory_space<vmem>>, vector<2x8x48xf32>,
    %c0_15 = arith.constant 0 : index
    %c0_16 = arith.constant 0 : index
    %c0_17 = arith.constant 0 : index
    %21 = vector.load %arg9[%c0_15, %c0_16, %c0_17] : memref<2x10x48xf32, #tpu.memory_space<vmem>>, vector<2x8x48xf32>
    %22 = vector.shape_cast %21 : vector<2x8x48xf32> to vector<16x48xf32>
    %23 = arith.truncf %22 : vector<16x48xf32> to vector<16x48xbf16>
    %c0_18 = arith.constant 0 : index
    %c0_19 = arith.constant 0 : index
    %c0_20 = arith.constant 0 : index
    %24 = vector.load %arg4[%c0_18, %c0_19, %c0_20] : memref<9x48x48xbf16, #tpu.memory_space<vmem>>, vector<1x48x48xbf16>
    %25 = vector.shape_cast %24 : vector<1x48x48xbf16> to vector<48x48xbf16>
    %cst_21 = arith.constant dense<0.000000e+00> : vector<16x48xf32>
    %26 = tpu.matmul %23, %25, %cst_21 {dimension_numbers = #tpu.dot_dimension_numbers<[1], [0], [0], [1], [0, 0, 1, 1], [], []>} : vector<16x48xbf16>, vector<48x48xbf16>, vector<16x48xf32> -> vector<16x48xf32>
    %c0_22 = arith.constant 0 : index
    %c1_23 = arith.constant 1 : index
    %c0_24 = arith.constant 0 : index
    %27 = vector.load %arg9[%c0_22, %c1_23, %c0_24] : memref<2x10x48xf32, #tpu.memory_space<vmem>>, vector<2x8x48xf32>
    %28 = vector.shape_cast %27 : vector<2x8x48xf32> to vector<16x48xf32>
    %29 = arith.truncf %28 : vector<16x48xf32> to vector<16x48xbf16>
    %c1_25 = arith.constant 1 : index
    %c0_26 = arith.constant 0 : index
    %c0_27 = arith.constant 0 : index
    %30 = vector.load %arg4[%c1_25, %c0_26, %c0_27] : memref<9x48x48xbf16, #tpu.memory_space<vmem>>, vector<1x48x48xbf16>
    %31 = vector.shape_cast %30 : vector<1x48x48xbf16> to vector<48x48xbf16>
    %cst_28 = arith.constant dense<0.000000e+00> : vector<16x48xf32>
    %32 = tpu.matmul %29, %31, %cst_28 {dimension_numbers = #tpu.dot_dimension_numbers<[1], [0], [0], [1], [0, 0, 1, 1], [], []>} : vector<16x48xbf16>, vector<48x48xbf16>, vector<16x48xf32> -> vector<16x48xf32>
    %33 = arith.addf %26, %32 : vector<16x48xf32>
    %c0_29 = arith.constant 0 : index
    %c2 = arith.constant 2 : index
    %c0_30 = arith.constant 0 : index
    %34 = vector.load %arg9[%c0_29, %c2, %c0_30] : memref<2x10x48xf32, #tpu.memory_space<vmem>>, vector<2x8x48xf32>
    %35 = vector.shape_cast %34 : vector<2x8x48xf32> to vector<16x48xf32>
    %36 = arith.truncf %35 : vector<16x48xf32> to vector<16x48xbf16>
    %c2_31 = arith.constant 2 : index
    %c0_32 = arith.constant 0 : index
    %c0_33 = arith.constant 0 : index
    %37 = vector.load %arg4[%c2_31, %c0_32, %c0_33] : memref<9x48x48xbf16, #tpu.memory_space<vmem>>, vector<1x48x48xbf16>
    %38 = vector.shape_cast %37 : vector<1x48x48xbf16> to vector<48x48xbf16>
    %cst_34 = arith.constant dense<0.000000e+00> : vector<16x48xf32>
    %39 = tpu.matmul %36, %38, %cst_34 {dimension_numbers = #tpu.dot_dimension_numbers<[1], [0], [0], [1], [0, 0, 1, 1], [], []>} : vector<16x48xbf16>, vector<48x48xbf16>, vector<16x48xf32> -> vector<16x48xf32>
    %40 = arith.addf %33, %39 : vector<16x48xf32>
    %c0_35 = arith.constant 0 : index
    %c0_36 = arith.constant 0 : index
    %c0_37 = arith.constant 0 : index
    %41 = vector.load %arg5[%c0_35, %c0_36, %c0_37] : memref<3x1x48xf32, #tpu.memory_space<vmem>>, vector<1x1x48xf32>
    %42 = vector.shape_cast %41 : vector<1x1x48xf32> to vector<1x48xf32>
    %43 = vector.broadcast %42 : vector<1x48xf32> to vector<16x48xf32>
    %44 = arith.addf %40, %43 : vector<16x48xf32>
    %cst_38 = arith.constant 0.000000e+00 : f32
    %45 = vector.broadcast %cst_38 : f32 to vector<16x48xf32>
    %46 = arith.maximumf %44, %45 : vector<16x48xf32>
    %47 = arith.truncf %46 : vector<16x48xf32> to vector<16x48xbf16>
    %c0_39 = arith.constant 0 : index
    %c0_40 = arith.constant 0 : index
    %c0_41 = arith.constant 0 : index
    %48 = vector.load %arg6[%c0_39, %c0_40, %c0_41] : memref<4x48x512xbf16, #tpu.memory_space<vmem>>, vector<1x48x512xbf16>
    %49 = vector.shape_cast %48 : vector<1x48x512xbf16> to vector<48x512xbf16>
    %cst_42 = arith.constant dense<0.000000e+00> : vector<16x512xf32>
    %50 = tpu.matmul %47, %49, %cst_42 {dimension_numbers = #tpu.dot_dimension_numbers<[1], [0], [0], [1], [0, 0, 1, 1], [], []>} : vector<16x48xbf16>, vector<48x512xbf16>, vector<16x512xf32> -> vector<16x512xf32>
    %51 = arith.addf %18, %50 : vector<16x512xf32>
    %52 = arith.addf %46, %10 : vector<16x48xf32>
    %53 = vector.shape_cast %52 : vector<16x48xf32> to vector<2x8x48xf32>
    %c0_43 = arith.constant 0 : index
    %c1_44 = arith.constant 1 : index
    %c0_45 = arith.constant 0 : index
    %54 = vector.load %arg9[%c0_43, %c1_44, %c0_45] : memref<2x10x48xf32, #tpu.memory_space<vmem>>, vector<2x8x48xf32>
    tpu.vector_store %arg9[%c0_43, %c1_44, %c0_45], %53 {strides = array<i32>} : memref<2x10x48xf32, #tpu.memory_space<vmem>>, vector<2x8x48xf32>,
    %c0_46 = arith.constant 0 : index
    %c0_47 = arith.constant 0 : index
    %c0_48 = arith.constant 0 : index
    %55 = vector.load %arg9[%c0_46, %c0_47, %c0_48] : memref<2x10x48xf32, #tpu.memory_space<vmem>>, vector<2x8x48xf32>
    %56 = vector.shape_cast %55 : vector<2x8x48xf32> to vector<16x48xf32>
    %57 = arith.truncf %56 : vector<16x48xf32> to vector<16x48xbf16>
    %c3_49 = arith.constant 3 : index
    %c0_50 = arith.constant 0 : index
    %c0_51 = arith.constant 0 : index
    %58 = vector.load %arg4[%c3_49, %c0_50, %c0_51] : memref<9x48x48xbf16, #tpu.memory_space<vmem>>, vector<1x48x48xbf16>
    %59 = vector.shape_cast %58 : vector<1x48x48xbf16> to vector<48x48xbf16>
    %cst_52 = arith.constant dense<0.000000e+00> : vector<16x48xf32>
    %60 = tpu.matmul %57, %59, %cst_52 {dimension_numbers = #tpu.dot_dimension_numbers<[1], [0], [0], [1], [0, 0, 1, 1], [], []>} : vector<16x48xbf16>, vector<48x48xbf16>, vector<16x48xf32> -> vector<16x48xf32>
    %c0_53 = arith.constant 0 : index
    %c1_54 = arith.constant 1 : index
    %c0_55 = arith.constant 0 : index
    %61 = vector.load %arg9[%c0_53, %c1_54, %c0_55] : memref<2x10x48xf32, #tpu.memory_space<vmem>>, vector<2x8x48xf32>
    %62 = vector.shape_cast %61 : vector<2x8x48xf32> to vector<16x48xf32>
    %63 = arith.truncf %62 : vector<16x48xf32> to vector<16x48xbf16>
    %c4 = arith.constant 4 : index
    %c0_56 = arith.constant 0 : index
    %c0_57 = arith.constant 0 : index
    %64 = vector.load %arg4[%c4, %c0_56, %c0_57] : memref<9x48x48xbf16, #tpu.memory_space<vmem>>, vector<1x48x48xbf16>
    %65 = vector.shape_cast %64 : vector<1x48x48xbf16> to vector<48x48xbf16>
    %cst_58 = arith.constant dense<0.000000e+00> : vector<16x48xf32>
    %66 = tpu.matmul %63, %65, %cst_58 {dimension_numbers = #tpu.dot_dimension_numbers<[1], [0], [0], [1], [0, 0, 1, 1], [], []>} : vector<16x48xbf16>, vector<48x48xbf16>, vector<16x48xf32> -> vector<16x48xf32>
    %67 = arith.addf %60, %66 : vector<16x48xf32>
    %c0_59 = arith.constant 0 : index
    %c2_60 = arith.constant 2 : index
    %c0_61 = arith.constant 0 : index
    %68 = vector.load %arg9[%c0_59, %c2_60, %c0_61] : memref<2x10x48xf32, #tpu.memory_space<vmem>>, vector<2x8x48xf32>
    %69 = vector.shape_cast %68 : vector<2x8x48xf32> to vector<16x48xf32>
    %70 = arith.truncf %69 : vector<16x48xf32> to vector<16x48xbf16>
    %c5 = arith.constant 5 : index
    %c0_62 = arith.constant 0 : index
    %c0_63 = arith.constant 0 : index
    %71 = vector.load %arg4[%c5, %c0_62, %c0_63] : memref<9x48x48xbf16, #tpu.memory_space<vmem>>, vector<1x48x48xbf16>
    %72 = vector.shape_cast %71 : vector<1x48x48xbf16> to vector<48x48xbf16>
    %cst_64 = arith.constant dense<0.000000e+00> : vector<16x48xf32>
    %73 = tpu.matmul %70, %72, %cst_64 {dimension_numbers = #tpu.dot_dimension_numbers<[1], [0], [0], [1], [0, 0, 1, 1], [], []>} : vector<16x48xbf16>, vector<48x48xbf16>, vector<16x48xf32> -> vector<16x48xf32>
    %74 = arith.addf %67, %73 : vector<16x48xf32>
    %c1_65 = arith.constant 1 : index
    %c0_66 = arith.constant 0 : index
    %c0_67 = arith.constant 0 : index
    %75 = vector.load %arg5[%c1_65, %c0_66, %c0_67] : memref<3x1x48xf32, #tpu.memory_space<vmem>>, vector<1x1x48xf32>
    %76 = vector.shape_cast %75 : vector<1x1x48xf32> to vector<1x48xf32>
    %77 = vector.broadcast %76 : vector<1x48xf32> to vector<16x48xf32>
    %78 = arith.addf %74, %77 : vector<16x48xf32>
    %cst_68 = arith.constant 0.000000e+00 : f32
    %79 = vector.broadcast %cst_68 : f32 to vector<16x48xf32>
    %80 = arith.maximumf %78, %79 : vector<16x48xf32>
    %81 = arith.truncf %80 : vector<16x48xf32> to vector<16x48xbf16>
    %c1_69 = arith.constant 1 : index
    %c0_70 = arith.constant 0 : index
    %c0_71 = arith.constant 0 : index
    %82 = vector.load %arg6[%c1_69, %c0_70, %c0_71] : memref<4x48x512xbf16, #tpu.memory_space<vmem>>, vector<1x48x512xbf16>
    %83 = vector.shape_cast %82 : vector<1x48x512xbf16> to vector<48x512xbf16>
    %cst_72 = arith.constant dense<0.000000e+00> : vector<16x512xf32>
    %84 = tpu.matmul %81, %83, %cst_72 {dimension_numbers = #tpu.dot_dimension_numbers<[1], [0], [0], [1], [0, 0, 1, 1], [], []>} : vector<16x48xbf16>, vector<48x512xbf16>, vector<16x512xf32> -> vector<16x512xf32>
    %85 = arith.addf %51, %84 : vector<16x512xf32>
    %86 = arith.addf %80, %11 : vector<16x48xf32>
    %87 = vector.shape_cast %86 : vector<16x48xf32> to vector<2x8x48xf32>
    %c0_73 = arith.constant 0 : index
    %c1_74 = arith.constant 1 : index
    %c0_75 = arith.constant 0 : index
    %88 = vector.load %arg9[%c0_73, %c1_74, %c0_75] : memref<2x10x48xf32, #tpu.memory_space<vmem>>, vector<2x8x48xf32>
    tpu.vector_store %arg9[%c0_73, %c1_74, %c0_75], %87 {strides = array<i32>} : memref<2x10x48xf32, #tpu.memory_space<vmem>>, vector<2x8x48xf32>,
    %c0_76 = arith.constant 0 : index
    %c0_77 = arith.constant 0 : index
    %c0_78 = arith.constant 0 : index
    %89 = vector.load %arg9[%c0_76, %c0_77, %c0_78] : memref<2x10x48xf32, #tpu.memory_space<vmem>>, vector<2x8x48xf32>
    %90 = vector.shape_cast %89 : vector<2x8x48xf32> to vector<16x48xf32>
    %91 = arith.truncf %90 : vector<16x48xf32> to vector<16x48xbf16>
    %c6 = arith.constant 6 : index
    %c0_79 = arith.constant 0 : index
    %c0_80 = arith.constant 0 : index
    %92 = vector.load %arg4[%c6, %c0_79, %c0_80] : memref<9x48x48xbf16, #tpu.memory_space<vmem>>, vector<1x48x48xbf16>
    %93 = vector.shape_cast %92 : vector<1x48x48xbf16> to vector<48x48xbf16>
    %cst_81 = arith.constant dense<0.000000e+00> : vector<16x48xf32>
    %94 = tpu.matmul %91, %93, %cst_81 {dimension_numbers = #tpu.dot_dimension_numbers<[1], [0], [0], [1], [0, 0, 1, 1], [], []>} : vector<16x48xbf16>, vector<48x48xbf16>, vector<16x48xf32> -> vector<16x48xf32>
    %c0_82 = arith.constant 0 : index
    %c1_83 = arith.constant 1 : index
    %c0_84 = arith.constant 0 : index
    %95 = vector.load %arg9[%c0_82, %c1_83, %c0_84] : memref<2x10x48xf32, #tpu.memory_space<vmem>>, vector<2x8x48xf32>
    %96 = vector.shape_cast %95 : vector<2x8x48xf32> to vector<16x48xf32>
    %97 = arith.truncf %96 : vector<16x48xf32> to vector<16x48xbf16>
    %c7 = arith.constant 7 : index
    %c0_85 = arith.constant 0 : index
    %c0_86 = arith.constant 0 : index
    %98 = vector.load %arg4[%c7, %c0_85, %c0_86] : memref<9x48x48xbf16, #tpu.memory_space<vmem>>, vector<1x48x48xbf16>
    %99 = vector.shape_cast %98 : vector<1x48x48xbf16> to vector<48x48xbf16>
    %cst_87 = arith.constant dense<0.000000e+00> : vector<16x48xf32>
    %100 = tpu.matmul %97, %99, %cst_87 {dimension_numbers = #tpu.dot_dimension_numbers<[1], [0], [0], [1], [0, 0, 1, 1], [], []>} : vector<16x48xbf16>, vector<48x48xbf16>, vector<16x48xf32> -> vector<16x48xf32>
    %101 = arith.addf %94, %100 : vector<16x48xf32>
    %c0_88 = arith.constant 0 : index
    %c2_89 = arith.constant 2 : index
    %c0_90 = arith.constant 0 : index
    %102 = vector.load %arg9[%c0_88, %c2_89, %c0_90] : memref<2x10x48xf32, #tpu.memory_space<vmem>>, vector<2x8x48xf32>
    %103 = vector.shape_cast %102 : vector<2x8x48xf32> to vector<16x48xf32>
    %104 = arith.truncf %103 : vector<16x48xf32> to vector<16x48xbf16>
    %c8 = arith.constant 8 : index
    %c0_91 = arith.constant 0 : index
    %c0_92 = arith.constant 0 : index
    %105 = vector.load %arg4[%c8, %c0_91, %c0_92] : memref<9x48x48xbf16, #tpu.memory_space<vmem>>, vector<1x48x48xbf16>
    %106 = vector.shape_cast %105 : vector<1x48x48xbf16> to vector<48x48xbf16>
    %cst_93 = arith.constant dense<0.000000e+00> : vector<16x48xf32>
    %107 = tpu.matmul %104, %106, %cst_93 {dimension_numbers = #tpu.dot_dimension_numbers<[1], [0], [0], [1], [0, 0, 1, 1], [], []>} : vector<16x48xbf16>, vector<48x48xbf16>, vector<16x48xf32> -> vector<16x48xf32>
    %108 = arith.addf %101, %107 : vector<16x48xf32>
    %c2_94 = arith.constant 2 : index
    %c0_95 = arith.constant 0 : index
    %c0_96 = arith.constant 0 : index
    %109 = vector.load %arg5[%c2_94, %c0_95, %c0_96] : memref<3x1x48xf32, #tpu.memory_space<vmem>>, vector<1x1x48xf32>
    %110 = vector.shape_cast %109 : vector<1x1x48xf32> to vector<1x48xf32>
    %111 = vector.broadcast %110 : vector<1x48xf32> to vector<16x48xf32>
    %112 = arith.addf %108, %111 : vector<16x48xf32>
    %cst_97 = arith.constant 0.000000e+00 : f32
    %113 = vector.broadcast %cst_97 : f32 to vector<16x48xf32>
    %114 = arith.maximumf %112, %113 : vector<16x48xf32>
    %115 = arith.truncf %114 : vector<16x48xf32> to vector<16x48xbf16>
    %c2_98 = arith.constant 2 : index
    %c0_99 = arith.constant 0 : index
    %c0_100 = arith.constant 0 : index
    %116 = vector.load %arg6[%c2_98, %c0_99, %c0_100] : memref<4x48x512xbf16, #tpu.memory_space<vmem>>, vector<1x48x512xbf16>
    %117 = vector.shape_cast %116 : vector<1x48x512xbf16> to vector<48x512xbf16>
    %cst_101 = arith.constant dense<0.000000e+00> : vector<16x512xf32>
    %118 = tpu.matmul %115, %117, %cst_101 {dimension_numbers = #tpu.dot_dimension_numbers<[1], [0], [0], [1], [0, 0, 1, 1], [], []>} : vector<16x48xbf16>, vector<48x512xbf16>, vector<16x512xf32> -> vector<16x512xf32>
    %119 = arith.addf %85, %118 : vector<16x512xf32>
    %c0_102 = arith.constant 0 : index
    %c0_103 = arith.constant 0 : index
    %120 = vector.load %arg7[%c0_102, %c0_103] : memref<1x512xf32, #tpu.memory_space<vmem>>, vector<1x512xf32>
    %121 = vector.broadcast %120 : vector<1x512xf32> to vector<16x512xf32>
    %122 = arith.addf %119, %121 : vector<16x512xf32>
    %123 = arith.addf %122, %0 : vector<16x512xf32>
    %cst_104 = arith.constant 0.000000e+00 : f32
    %124 = vector.broadcast %cst_104 : f32 to vector<16x512xf32>
    %125 = arith.maximumf %123, %124 : vector<16x512xf32>
    %c0_105 = arith.constant 0 : index
    %c0_106 = arith.constant 0 : index
    %126 = vector.load %arg8[%c0_105, %c0_106] : memref<16x512xf32, #tpu.memory_space<vmem>>, vector<16x512xf32>
    tpu.vector_store %arg8[%c0_105, %c0_106], %125 {strides = array<i32>} : memref<16x512xf32, #tpu.memory_space<vmem>>, vector<16x512xf32>,
    return
  }
  func.func @transform_0(%arg0: i32) -> (i32, i32) {
    %c0_i32 = arith.constant 0 : i32
    %c0_i32_0 = arith.constant 0 : i32
    return %arg0, %c0_i32 : i32, i32
  }
  func.func @transform_1(%arg0: i32) -> (i32, i32) {
    %c0_i32 = arith.constant 0 : i32
    %c0_i32_0 = arith.constant 0 : i32
    %c0_i32_1 = arith.constant 0 : i32
    return %c0_i32, %c0_i32_0 : i32, i32
  }
  func.func @transform_2(%arg0: i32) -> (i32, i32) {
    %c0_i32 = arith.constant 0 : i32
    %c0_i32_0 = arith.constant 0 : i32
    %c0_i32_1 = arith.constant 0 : i32
    return %c0_i32, %c0_i32_0 : i32, i32
  }
  func.func @transform_3(%arg0: i32) -> (i32, i32, i32) {
    %c0_i32 = arith.constant 0 : i32
    %c0_i32_0 = arith.constant 0 : i32
    %c0_i32_1 = arith.constant 0 : i32
    %c0_i32_2 = arith.constant 0 : i32
    return %c0_i32, %c0_i32_0, %c0_i32_1 : i32, i32, i32
  }
  func.func @transform_4(%arg0: i32) -> (i32, i32, i32) {
    %c0_i32 = arith.constant 0 : i32
    %c0_i32_0 = arith.constant 0 : i32
    %c0_i32_1 = arith.constant 0 : i32
    %c0_i32_2 = arith.constant 0 : i32
    return %c0_i32, %c0_i32_0, %c0_i32_1 : i32, i32, i32
  }
  func.func @transform_5(%arg0: i32) -> (i32, i32, i32) {
    %c0_i32 = arith.constant 0 : i32
    %c0_i32_0 = arith.constant 0 : i32
    %c0_i32_1 = arith.constant 0 : i32
    %c0_i32_2 = arith.constant 0 : i32
    return %c0_i32, %c0_i32_0, %c0_i32_1 : i32, i32, i32
  }
  func.func @transform_6(%arg0: i32) -> (i32, i32) {
    %c0_i32 = arith.constant 0 : i32
    %c0_i32_0 = arith.constant 0 : i32
    %c0_i32_1 = arith.constant 0 : i32
    return %c0_i32, %c0_i32_0 : i32, i32
  }
  func.func @transform_7(%arg0: i32) -> (i32, i32) {
    %c0_i32 = arith.constant 0 : i32
    %c0_i32_0 = arith.constant 0 : i32
    return %arg0, %c0_i32 : i32, i32
  }
}

</mosaic_0001>

<bundles_post_ra>
// kernel: tpu_custom_call.1
= control target key start
LH: loop header
LB: loop body
LE: loop exit
PB: predicated region body
PF: predicated region fallthrough
CT: control target
= control target key end

     0   :  { %s3272_s0 = inlined_call_operand.vmem [shape: f32[16,512], index: 0, kind: input, shape index: {}]   ;;  %s3273_s1 = inlined_call_operand.vmem [shape: bf16[512,192], index: 1, kind: input, shape index: {}]   ;;  %s3274_s2 = inlined_call_operand.vmem [shape: f32[1,192], index: 2, kind: input, shape index: {}]   ;;  %s3275_s3 = inlined_call_operand.vmem [shape: bf16[9,48,48], index: 3, kind: input, shape index: {}]   ;;  %s3276_s4 = inlined_call_operand.vmem [shape: f32[3,1,48], index: 4, kind: input, shape index: {}]   ;;  %s3277_s5 = inlined_call_operand.vmem [shape: bf16[4,48,512], index: 5, kind: input, shape index: {}]   ;;  %s3278_s6 = inlined_call_operand.vmem [shape: f32[1,512], index: 6, kind: input, shape index: {}]   ;;  %s3279_s7 = inlined_call_operand.hbm [shape: f32[16,512], index: 7, kind: output, shape index: {}]  }
   0x1   :  { %v2404_v0 = vld [vmem:[%s3273_s1 + $0x4] ss:$8 sps:$4 sm:$0xff]   ;;  %v2406_v1 = vld [vmem:[%s3273_s1] ss:$8 sps:$4 sm:$0xff]   ;;  %v2407_v2 = vld [vmem:[%s3273_s1 + $0x14] ss:$8 sps:$4 sm:$0xff]  }
   0x2   :  { %436 = vmatprep.subr.bf16.mxu0 %v2404_v0  ;;  %v2409_v3 = vld [vmem:[%s3273_s1 + $0x10] ss:$8 sps:$4 sm:$0xff]   ;;  %v2410_v4 = vld [vmem:[%s3273_s1 + $0x24] ss:$8 sps:$4 sm:$0xff]   ;;  %v2412_v5 = vld [vmem:[%s3273_s1 + $0x20] ss:$8 sps:$4 sm:$0xff]  }
   0x3   :  { %437 = vmatpush1.bf16.msra.mxu0 %v2406_v1  ;;  %v2413_v6 = vld [vmem:[%s3273_s1 + $0x34] ss:$8 sps:$4 sm:$0xff]   ;;  %v2415_v7 = vld [vmem:[%s3273_s1 + $0x30] ss:$8 sps:$4 sm:$0xff]   ;;  %v2416_v8 = vld [vmem:[%s3273_s1 + $0x44] ss:$8 sps:$4 sm:$0xff]  }
   0x4   :  { %438 = vmatprep.subr.bf16.mxu0 %v2407_v2  ;;  %v2418_v9 = vld [vmem:[%s3273_s1 + $0x40] ss:$8 sps:$4 sm:$0xff]   ;;  %v2419_v10 = vld [vmem:[%s3273_s1 + $0x54] ss:$8 sps:$4 sm:$0xff]   ;;  %v2421_v11 = vld [vmem:[%s3273_s1 + $0x50] ss:$8 sps:$4 sm:$0xff]  }
   0x5   :  { %v2422_v12 = vld [vmem:[%s3273_s1 + $0x64] ss:$8 sps:$4 sm:$0xff]   ;;  %v2424_v16 = vld [vmem:[%s3273_s1 + $0x60] ss:$8 sps:$4 sm:$0xff]   ;;  %v2425_v17 = vld [vmem:[%s3273_s1 + $0x74] ss:$8 sps:$4 sm:$0xff]  }
   0x6   :  { %v29_v13 = vld [vmem:[%s3272_s0 + $0x8] sm:$0xff]  ;;  %v2427_v18 = vld [vmem:[%s3273_s1 + $0x70] ss:$8 sps:$4 sm:$0xff]   ;;  %v2431_v21 = vld [vmem:[%s3273_s1 + $0x94] ss:$8 sps:$4 sm:$0xff]  }
   0x7   :  { %439 = vmatpush1.bf16.msra.mxu0 %v2409_v3  ;;  %v33_v14 = vld [vmem:[%s3272_s0 + $0x28] sm:$0xff]  ;;  %v2433_v22 = vld [vmem:[%s3273_s1 + $0x90] ss:$8 sps:$4 sm:$0xff]   ;;  %v2437_v25 = vld [vmem:[%s3273_s1 + $0xb4] ss:$8 sps:$4 sm:$0xff]  }
   0x8   :  { %440 = vmatprep.subr.bf16.mxu0 %v2410_v4  ;;  %v37_v15 = vpack.c.bf16 %v33_v14, %v29_v13  ;;  %v2428_v19 = vld [vmem:[%s3273_s1 + $0x84] ss:$8 sps:$4 sm:$0xff]   ;;  %v2430_v20 = vld [vmem:[%s3273_s1 + $0x80] ss:$8 sps:$4 sm:$0xff]   ;;  %v2439_v26 = vld [vmem:[%s3273_s1 + $0xb0] ss:$8 sps:$4 sm:$0xff]  }
   0x9   :  { %v2434_v23 = vld [vmem:[%s3273_s1 + $0xa4] ss:$8 sps:$4 sm:$0xff]   ;;  %v2436_v24 = vld [vmem:[%s3273_s1 + $0xa0] ss:$8 sps:$4 sm:$0xff]   ;;  %v2443_v29 = vld [vmem:[%s3273_s1 + $0xd4] ss:$8 sps:$4 sm:$0xff]  }
   0xa   :  { %468 = vmatprep.mubr.bf16.mxu0 %v37_v15  ;;  %v2440_v27 = vld [vmem:[%s3273_s1 + $0xc4] ss:$8 sps:$4 sm:$0xff]   ;;  %v2442_v28 = vld [vmem:[%s3273_s1 + $0xc0] ss:$8 sps:$4 sm:$0xff]   ;;  %v2445_v30 = vld [vmem:[%s3273_s1 + $0xd0] ss:$8 sps:$4 sm:$0xff]  }
   0xb   :  { %441 = vmatpush1.bf16.msra.mxu0 %v2412_v5  ;;  %v2446_v31 = vld [vmem:[%s3273_s1 + $0xe4] ss:$8 sps:$4 sm:$0xff]   ;;  %v2448_v32 = vld [vmem:[%s3273_s1 + $0xe0] ss:$8 sps:$4 sm:$0xff]   ;;  %v2449_v33 = vld [vmem:[%s3273_s1 + $0xf4] ss:$8 sps:$4 sm:$0xff]  }
   0xc   :  { %442 = vmatprep.subr.bf16.mxu0 %v2413_v6  ;;  %v2451_v34 = vld [vmem:[%s3273_s1 + $0xf0] ss:$8 sps:$4 sm:$0xff]   ;;  %v28_v35 = vld [vmem:[%s3272_s0] sm:$0xff]  ;;  %v2457_v42 = vld [vmem:[%s3273_s1 + $0x114] ss:$8 sps:$4 sm:$0xff]  }
   0xd   :  { %v32_v36 = vld [vmem:[%s3272_s0 + $0x20] sm:$0xff]  ;;  %v31_v38 = vld [vmem:[%s3272_s0 + $0x18] sm:$0xff] }
   0xe   :  { %v2454_v37 = vld [vmem:[%s3273_s1 + $0x104] ss:$8 sps:$4 sm:$0xff]   ;;  %v35_v39 = vld [vmem:[%s3272_s0 + $0x38] sm:$0xff]  ;;  %v2452_v40 = vld [vmem:[%s3273_s1 + $0x100] ss:$8 sps:$4 sm:$0xff]   ;;  %v36_v41 = vpack.c.bf16 %v32_v36, %v28_v35 }
   0xf   :  { %443 = vmatpush1.bf16.msra.mxu0 %v2415_v7  ;;  %v39_v43 = vpack.c.bf16 %v35_v39, %v31_v38  ;;  %v2455_v44 = vld [vmem:[%s3273_s1 + $0x110] ss:$8 sps:$4 sm:$0xff]   ;;  %v2460_v45 = vld [vmem:[%s3273_s1 + $0x124] ss:$8 sps:$4 sm:$0xff]   ;;  %v2458_v46 = vld [vmem:[%s3273_s1 + $0x120] ss:$8 sps:$4 sm:$0xff]  }
  0x10   :  { %444 = vmatprep.subr.bf16.mxu0 %v2416_v8  ;;  %v2463_v47 = vld [vmem:[%s3273_s1 + $0x134] ss:$8 sps:$4 sm:$0xff]   ;;  %v2461_v48 = vld [vmem:[%s3273_s1 + $0x130] ss:$8 sps:$4 sm:$0xff]   ;;  %v2466_v49 = vld [vmem:[%s3273_s1 + $0x144] ss:$8 sps:$4 sm:$0xff]  }
  0x11   :  { %v2464_v50 = vld [vmem:[%s3273_s1 + $0x140] ss:$8 sps:$4 sm:$0xff]  }
  0x13   :  { %445 = vmatpush1.bf16.msra.mxu0 %v2418_v9 }
  0x14   :  { %446 = vmatprep.subr.bf16.mxu0 %v2419_v10 }
  0x17   :  { %447 = vmatpush1.bf16.msra.mxu0 %v2421_v11 }
  0x18   :  { %448 = vmatprep.subr.bf16.mxu0 %v2422_v12 }
  0x1b   :  { %449 = vmatpush1.bf16.msra.mxu0 %v2424_v16 }
  0x1c   :  { %450 = vmatprep.subr.bf16.mxu0 %v2425_v17 }
  0x1f   :  { %451 = vmatpush1.bf16.msra.mxu0 %v2427_v18 }
  0x20   :  { %452 = vmatprep.subr.bf16.mxu0 %v2428_v19 }
  0x23   :  { %453 = vmatpush1.bf16.msra.mxu0 %v2430_v20 }
  0x24   :  { %454 = vmatprep.subr.bf16.mxu0 %v2431_v21 }
  0x27   :  { %455 = vmatpush1.bf16.msra.mxu0 %v2433_v22 }
  0x28   :  { %456 = vmatprep.subr.bf16.mxu0 %v2434_v23 }
  0x2b   :  { %457 = vmatpush1.bf16.msra.mxu0 %v2436_v24 }
  0x2c   :  { %458 = vmatprep.subr.bf16.mxu0 %v2437_v25 }
  0x2f   :  { %459 = vmatpush1.bf16.msra.mxu0 %v2439_v26 }
  0x30   :  { %460 = vmatprep.subr.bf16.mxu0 %v2440_v27 }
  0x33   :  { %461 = vmatpush1.bf16.msra.mxu0 %v2442_v28 }
  0x34   :  { %462 = vmatprep.subr.bf16.mxu0 %v2443_v29 }
  0x37   :  { %463 = vmatpush1.bf16.msra.mxu0 %v2445_v30 }
  0x38   :  { %464 = vmatprep.subr.bf16.mxu0 %v2446_v31 }
  0x3b   :  { %465 = vmatpush1.bf16.msra.mxu0 %v2448_v32 }
  0x3c   :  { %466 = vmatprep.subr.bf16.mxu0 %v2449_v33 }
  0x3f   :  { %467 = vmatpush1.bf16.msra.mxu0 %v2451_v34 }
  0x40   :  { %479 = vmatprep.subr.bf16.mxu0 %v2454_v37 }
  0x42   :  { %469 = vmatmul.mubr.bf16.vlgmr.msra.gmra.mrb[0].mxu0 %v36_v41 }
  0x43   :  { %480 = vmatpush1.bf16.msra.mxu0 %v2452_v40  ;;  %511 = vmatprep.mubr.bf16.mxu0 %v39_v43 }
  0x44   :  { %481 = vmatprep.subr.bf16.mxu0 %v2457_v42 }
  0x47   :  { %482 = vmatpush1.bf16.msra.mxu0 %v2455_v44 }
  0x48   :  { %483 = vmatprep.subr.bf16.mxu0 %v2460_v45 }
  0x4b   :  { %484 = vmatpush1.bf16.msra.mxu0 %v2458_v46 }
  0x4c   :  { %485 = vmatprep.subr.bf16.mxu0 %v2463_v47 }
  0x4f   :  { %486 = vmatpush1.bf16.msra.mxu0 %v2461_v48 }
  0x50   :  { %12 = vsyncpa [#allocation4], 0  ;;  %487 = vmatprep.subr.bf16.mxu0 %v2466_v49  ;;  %v2469_v51 = vld [vmem:[%s3273_s1 + $0x154] ss:$8 sps:$4 sm:$0xff]   ;;  %v2467_v52 = vld [vmem:[%s3273_s1 + $0x150] ss:$8 sps:$4 sm:$0xff]   ;;  %v106_v19 = vlaneseq }
  0x51   :  { %v2472_v53 = vld [vmem:[%s3273_s1 + $0x164] ss:$8 sps:$4 sm:$0xff]   ;;  %v2470_v54 = vld [vmem:[%s3273_s1 + $0x160] ss:$8 sps:$4 sm:$0xff]   ;;  %v2475_v55 = vld [vmem:[%s3273_s1 + $0x174] ss:$8 sps:$4 sm:$0xff]  }
  0x52   :  { %v2473_v56 = vld [vmem:[%s3273_s1 + $0x170] ss:$8 sps:$4 sm:$0xff]   ;;  %v2478_v57 = vld [vmem:[%s3273_s1 + $0x184] ss:$8 sps:$4 sm:$0xff]   ;;  %v2476_v58 = vld [vmem:[%s3273_s1 + $0x180] ss:$8 sps:$4 sm:$0xff]  }
  0x53   :  { %488 = vmatpush1.bf16.msra.mxu0 %v2464_v50  ;;  %v2481_v59 = vld [vmem:[%s3273_s1 + $0x194] ss:$8 sps:$4 sm:$0xff]   ;;  %v2479_v60 = vld [vmem:[%s3273_s1 + $0x190] ss:$8 sps:$4 sm:$0xff]   ;;  %v2484_v61 = vld [vmem:[%s3273_s1 + $0x1a4] ss:$8 sps:$4 sm:$0xff]  }
  0x54   :  { %489 = vmatprep.subr.bf16.mxu0 %v2469_v51  ;;  %v2482_v62 = vld [vmem:[%s3273_s1 + $0x1a0] ss:$8 sps:$4 sm:$0xff]   ;;  %v2487_v63 = vld [vmem:[%s3273_s1 + $0x1b4] ss:$8 sps:$4 sm:$0xff]   ;;  %v2485_v0 = vld [vmem:[%s3273_s1 + $0x1b0] ss:$8 sps:$4 sm:$0xff]  }
  0x55   :  { %v2490_v1 = vld [vmem:[%s3273_s1 + $0x1c4] ss:$8 sps:$4 sm:$0xff]   ;;  %v2488_v2 = vld [vmem:[%s3273_s1 + $0x1c0] ss:$8 sps:$4 sm:$0xff]   ;;  %v2493_v3 = vld [vmem:[%s3273_s1 + $0x1d4] ss:$8 sps:$4 sm:$0xff]  }
  0x56   :  { %v2491_v4 = vld [vmem:[%s3273_s1 + $0x1d0] ss:$8 sps:$4 sm:$0xff]   ;;  %v2496_v5 = vld [vmem:[%s3273_s1 + $0x1e4] ss:$8 sps:$4 sm:$0xff]   ;;  %v2494_v6 = vld [vmem:[%s3273_s1 + $0x1e0] ss:$8 sps:$4 sm:$0xff]  }
  0x57   :  { %490 = vmatpush1.bf16.msra.mxu0 %v2467_v52  ;;  %v2499_v7 = vld [vmem:[%s3273_s1 + $0x1f4] ss:$8 sps:$4 sm:$0xff]   ;;  %v2497_v8 = vld [vmem:[%s3273_s1 + $0x1f0] ss:$8 sps:$4 sm:$0xff]   ;;  %vm526_vm0 = vcmask 392192   ;;  %vm528_vm1 = vcmask 386048  }
  0x58   :  { %491 = vmatprep.subr.bf16.mxu0 %v2472_v53  ;;  %v2890_v9 = vld [vmem:[%s3272_s0 + $0x10] sm:$0xff]  ;;  %v2500_v12 = vld [vmem:[%s3275_s3] sm:$0xff]   ;;  %v2629_v13 = vmov 0.0   ;;  %v2501_v14 = vld [vmem:[%s3275_s3 + $0x18] sm:$0xff]   ;;  %vm2630_vm2 = vmmov 0   ;;  %v2935_v20 = vshrl.u32 %v106_v19, 7 }
  0x59   :  { %v2895_v10 = vld [vmem:[%s3272_s0 + $0x30] sm:$0xff]  ;;  %527 = vst.msk [vmem:[#allocation2] sm:$0xff] %vm526_vm0, %v2629_v13  ;;  %530 = vst.msk [vmem:[#allocation2 + $0x10] sm:$0xff] %vm526_vm0, %v2629_v13  ;;  %2284 = vmatprep.subr.bf16.mxu1 %v2629_v13  ;;  %v2502_v15 = vld [vmem:[%s3275_s3 + $0x8] sm:$0xff]   ;;  %2290 = vmatprep.mubr.msk.bf16.mxu1 %vm2630_vm2, %v2629_v13  ;;  %s2632_s20 = smov 112   ;;  %s2633_s21 = smov 32  }
  0x5a   :  { %v38_v11 = vpack.c.bf16 %v2895_v10, %v2890_v9  ;;  %529 = vst.msk [vmem:[#allocation2 + $0x8] sm:$0x3] %vm528_vm1, %v2629_v13  ;;  %531 = vst.msk [vmem:[#allocation2 + $0x18] sm:$0x3] %vm528_vm1, %v2629_v13  ;;  %2285 = vmatpush3.bf16.msra.mxu1 %v2500_v12  ;;  %v2503_v16 = vld [vmem:[%s3275_s3 + $0x20] sm:$0xff]   ;;  %v2504_v17 = vld [vmem:[%s3275_s3 + $0x10] sm:$0xff]  }
  0x5b   :  { %492 = vmatpush1.bf16.msra.mxu0 %v2470_v54  ;;  %2286 = vmatprep.subr.bf16.mxu1 %v2629_v13  ;;  %v2505_v18 = vld [vmem:[%s3275_s3 + $0x28] sm:$0xff]   ;;  %v108_v21 = vsub.s32 0, %v2935_v20  ;;  %v104_v22 = vld [vmem:[%s3274_s2] sm:$0x3]  ;;  %v112_v23 = vsub.s32 1, %v2935_v20  ;;  %s2631_s2 = smov 80  }
  0x5c   :  { %493 = vmatprep.subr.bf16.mxu0 %v2475_v55  ;;  %v2506_v40 = vld [vmem:[%s3275_s3 + $0x30] sm:$0xff]   ;;  %v2507_v46 = vld [vmem:[%s3275_s3 + $0x38] sm:$0xff]   ;;  %v2508_v47 = vld [vmem:[%s3275_s3 + $0x40] sm:$0xff]   ;;  %vm1513_vm3 = vcmask 261120   ;;  %s2635_s29 = smov [#allocation3]  }
  0x5d   :  { %v109_v24 = vrot.slane %v104_v22, %v108_v21  ;;  %v113_v25 = vrot.slane %v104_v22, %v112_v23  ;;  %v2509_v51 = vld [vmem:[%s3277_s5] ss:$16 sps:$4 sm:$0xff]   ;;  %v2511_v52 = vld [vmem:[%s3277_s5 + $0x4] ss:$16 sps:$4 sm:$0xff]   ;;  %s1982_s30 = sshll.u32 %s2635_s29, 4  ;;  %s1983_s30 = int_to_ptr.vmem [resolvable:$true] %s1982_s30 }
  0x5e   :  { %2287 = vmatpush3.bf16.msra.mxu1 %v2502_v15  ;;  %v2514_v53 = vld [vmem:[%s3277_s5 + $0x24] ss:$16 sps:$4 sm:$0xff]   ;;  %v2512_v54 = vld [vmem:[%s3277_s5 + $0x20] ss:$16 sps:$4 sm:$0xff]   ;;  %s2605_s9 = scalar_lea.vmem %s1983_s30, 1024  ;;  %p2610_p1 = scmp.lt.s32.totalorder %s1983_s30, %s1983_s30 }
  0x5f   :  { %494 = vmatpush1.bf16.msra.mxu0 %v2473_v56  ;;  %2288 = vmatprep.subr.bf16.mxu1 %v2629_v13  ;;  %v2517_v55 = vld [vmem:[%s3277_s5 + $0x44] ss:$16 sps:$4 sm:$0xff]   ;;  %v2515_v56 = vld [vmem:[%s3277_s5 + $0x40] ss:$16 sps:$4 sm:$0xff]   ;;  %p2606_p0 = scmp.ne.s32.totalorder %s1983_s30, %s2605_s9  ;;  %p2611_p2 = scmp.lt.s32.totalorder %s2605_s9, %s2605_s9 }
  0x60   :  { %495 = vmatprep.subr.bf16.mxu0 %v2478_v57  ;;  %v2520_v57 = vld [vmem:[%s3277_s5 + $0xc] ss:$16 sps:$4 sm:$0xff]  }
  0x61   :  { %p2612_p3 = por %p2611_p2, %p2610_p1 }
  0x62   :  { %2289 = vmatpush3.bf16.msra.mxu1 %v2504_v17 }
  0x63   :  { %496 = vmatpush1.bf16.msra.mxu0 %v2476_v58  ;;  %2294 = vmatprep.subr.bf16.mxu1 %v2629_v13  ;;  %v2634_v58 = vmov 0   ;;  %p2613_p4 = pnand %p2612_p3, %p2606_p0 }
  0x64   :  { %497 = vmatprep.subr.bf16.mxu0 %v2481_v59 }
  0x67   :  { %498 = vmatpush1.bf16.msra.mxu0 %v2479_v60 }
  0x68   :  { %499 = vmatprep.subr.bf16.mxu0 %v2484_v61 }
  0x6b   :  { %500 = vmatpush1.bf16.msra.mxu0 %v2482_v62 }
  0x6c   :  { %501 = vmatprep.subr.bf16.mxu0 %v2487_v63 }
  0x6f   :  { %502 = vmatpush1.bf16.msra.mxu0 %v2485_v0 }
  0x70   :  { %503 = vmatprep.subr.bf16.mxu0 %v2490_v1 }
  0x73   :  { %504 = vmatpush1.bf16.msra.mxu0 %v2488_v2 }
  0x74   :  { %505 = vmatprep.subr.bf16.mxu0 %v2493_v3 }
  0x77   :  { %506 = vmatpush1.bf16.msra.mxu0 %v2491_v4 }
  0x78   :  { %507 = vmatprep.subr.bf16.mxu0 %v2496_v5 }
  0x7b   :  { %508 = vmatpush1.bf16.msra.mxu0 %v2494_v6 }
  0x7c   :  { %509 = vmatprep.subr.bf16.mxu0 %v2499_v7  ;;  %v2093_v7 = vld [vmem:[%s3276_s4] ss:$0 sm:$0xff] }
  0x7f   :  { %510 = vmatpush1.bf16.msra.mxu0 %v2497_v8 }
  0x80   :  { %2274 = vmatprep.subr.bf16.mxu0 %v2629_v13 }
  0x82   :  { %512 = vmatmul.mubr.bf16.vlgmr.msra.gmra.mrb[0].mxu0 %v38_v11 }
  0x83   :  { %2275 = vmatpush3.bf16.msra.mxu0 %v2501_v14  ;;  %2280 = vmatprep.mubr.msk.bf16.mxu0 %vm2630_vm2, %v2629_v13 }
  0x84   :  { %2276 = vmatprep.subr.bf16.mxu0 %v2629_v13 }
  0x87   :  { %2277 = vmatpush3.bf16.msra.mxu0 %v2503_v16 }
  0x88   :  { %2278 = vmatprep.subr.bf16.mxu0 %v2629_v13 }
  0x8b   :  { %2279 = vmatpush3.bf16.msra.mxu0 %v2505_v18 }
  0x8c   :  { %2334 = vmatprep.subr.bf16.mxu0 %v2629_v13 }
 0x155   :  { %v513_v26 = vpop.f32.mrb[0].mxu0 }
 0x156   :  { %v2364_v27 = vadd.f32 %v513_v26, %v109_v24  ;;  %v515_v28 = vpop.f32.mrb[1].mxu0  ;;  %v2518_v26 = vld [vmem:[%s3277_s5 + $0x8] ss:$16 sps:$4 sm:$0xff]  }
 0x157   :  { %v2365_v29 = vadd.f32 %v515_v28, %v113_v25  ;;  %v517_v30 = vpop.f32.mrb[2].mxu0 }
 0x158   :  { %v522_v31 = vmax.f32 %v2364_v27, 0.0  ;;  %v2366_v32 = vadd.f32 %v517_v30, %v109_v24  ;;  %v519_v33 = vpop.f32.mrb[3].mxu0  ;;  %v2521_v30 = vld [vmem:[%s3277_s5 + $0x28] ss:$16 sps:$4 sm:$0xff]  }
 0x159   :  { %v2367_v34 = vadd.f32 %v519_v33, %v113_v25  ;;  %v523_v36 = vmax.f32 %v2365_v29, 0.0  ;;  %v2523_v29 = vld [vmem:[%s3277_s5 + $0x2c] ss:$16 sps:$4 sm:$0xff]   ;;  %v2529_v33 = vld [vmem:[%s3277_s5 + $0x124] ss:$16 sps:$4 sm:$0xff]  }
 0x15a   :  { %546 = vst.msk [vmem:[#allocation2 + $0x1] sm:$0xff] %vm526_vm0, %v522_v31  ;;  %v524_v35 = vmax.f32 %v2366_v32, 0.0  ;;  %v2524_v32 = vld [vmem:[%s3277_s5 + $0x48] ss:$16 sps:$4 sm:$0xff]  }
 0x15b   :  { %v525_v37 = vmax.f32 %v2367_v34, 0.0  ;;  %v2527_v34 = vld [vmem:[%s3277_s5 + $0x120] ss:$16 sps:$4 sm:$0xff]  }
 0x15c   :  { %547 = vst.msk [vmem:[#allocation2 + $0x11] sm:$0xff] %vm526_vm0, %v524_v35  ;;  %1094 = vrot.lane.b32.xlu1 %v524_v35, %s2631_s2 }
 0x15d   :  { %v532_v38 = vpack.c.bf16 %v525_v37, %v523_v36 }
 0x15f   :  { %939 = vrot.lane.b32.xlu0 %v532_v38, %s2632_s20  ;;  %v2533_v38 = vld [vmem:[%s3277_s5 + $0x160] ss:$16 sps:$4 sm:$0xff]  }
 0x160   :  { %1505 = vrot.lane.b32.xlu1 %v522_v31, %s2633_s21 }
 0x161   :  { %v557_v39 = vld [vmem:[#allocation2 + $0x1] sm:$0xff] }
 0x162   :  { %v548_v42 = vld [vmem:[#allocation2] sm:$0xff] }
 0x163   :  { %1092 = vrot.lane.b32.xlu0 %v522_v31, %s2631_s2  ;;  %v558_v41 = vld [vmem:[#allocation2 + $0x11] sm:$0xff]  ;;  %v691_v49 = vld [vmem:[#allocation2 + $0x2] sm:$0xff]  ;;  %v2526_v31 = vld [vmem:[%s3277_s5 + $0x4c] ss:$16 sps:$4 sm:$0xff]  }
 0x164   :  { %v549_v43 = vld [vmem:[#allocation2 + $0x10] sm:$0xff]  ;;  %1509 = vrot.lane.b32.xlu1 %v524_v35, %s2633_s21  ;;  %v559_v44 = vpack.c.bf16 %v558_v41, %v557_v39  ;;  %v2538_v39 = vld [vmem:[%s3277_s5 + $0x12c] ss:$16 sps:$4 sm:$0xff]  }
 0x165   :  { %v550_v45 = vpack.c.bf16 %v549_v43, %v548_v42  ;;  %v692_v48 = vld [vmem:[#allocation2 + $0x12] sm:$0xff]  ;;  %v2541_v41 = vld [vmem:[%s3277_s5 + $0x14c] ss:$16 sps:$4 sm:$0xff]  }
 0x166   :  { %2281 = vmatmul.mubr.msk.bf16.vlgmr.msra.gmra.mrb[4].mxu0 %vm526_vm0, %v559_v44  ;;  %v693_v50 = vpack.c.bf16 %v692_v48, %v691_v49  ;;  %v2532_v35 = vld [vmem:[%s3277_s5 + $0x144] ss:$16 sps:$4 sm:$0xff]   ;;  %v2539_v42 = vld [vmem:[%s3277_s5 + $0x148] ss:$16 sps:$4 sm:$0xff]   ;;  %v2544_v43 = vld [vmem:[%s3277_s5 + $0x16c] ss:$16 sps:$4 sm:$0xff]  }
 0x167   :  { %2291 = vmatmul.mubr.msk.bf16.vlgmr.msra.gmra.mrb[0].mxu1 %vm526_vm0, %v550_v45  ;;  %1507 = vrot.lane.b32.xlu0 %v523_v36, %s2633_s21  ;;  %v2530_v36 = vld [vmem:[%s3277_s5 + $0x140] ss:$16 sps:$4 sm:$0xff]   ;;  %v2542_v44 = vld [vmem:[%s3277_s5 + $0x168] ss:$16 sps:$4 sm:$0xff]  }
 0x168   :  { %2295 = vmatpush3.bf16.msra.mxu1 %v2506_v40  ;;  %2300 = vmatprep.mubr.msk.bf16.mxu1 %vm2630_vm2, %v2629_v13  ;;  %v2536_v40 = vld [vmem:[%s3277_s5 + $0x128] ss:$16 sps:$4 sm:$0xff]   ;;  %v2545_v45 = vld [vmem:[%s3275_s3 + $0x60] sm:$0xff]  }
 0x169   :  { %2296 = vmatprep.subr.bf16.mxu1 %v2629_v13  ;;  %2340 = vmatprep.mubr.msk.bf16.mxu0 %vm2630_vm2, %v2629_v13 }
 0x16b   :  { %1511 = vrot.lane.b32.xlu0 %v525_v37, %s2633_s21  ;;  %v2535_v37 = vld [vmem:[%s3277_s5 + $0x164] ss:$16 sps:$4 sm:$0xff]  }
 0x16c   :  { %2297 = vmatpush3.bf16.msra.mxu1 %v2507_v46  ;;  %v2546_v46 = vld [vmem:[%s3275_s3 + $0x68] sm:$0xff]  }
 0x16d   :  { %2298 = vmatprep.subr.bf16.mxu1 %v2629_v13 }
 0x170   :  { %2299 = vmatpush3.bf16.msra.mxu1 %v2508_v47  ;;  %v2547_v47 = vld [vmem:[%s3275_s3 + $0x70] sm:$0xff]  }
 0x171   :  { %852 = vmatprep.subr.bf16.mxu1 %v2511_v52  ;;  %v2549_v52 = vld [vmem:[%s3275_s3 + $0x50] sm:$0xff]  }
 0x173   :  { %2301 = vmatmul.mubr.msk.bf16.vlgmr.msra.gmra.mrb[4].mxu1 %vm526_vm0, %v693_v50  ;;  %v2548_v50 = vld [vmem:[%s3275_s3 + $0x48] sm:$0xff]  }
 0x174   :  { %853 = vmatpush1.bf16.msra.mxu1 %v2509_v51  ;;  %884 = vmatprep.mubr.bf16.mxu1 %v2634_v58 }
 0x175   :  { %854 = vmatprep.subr.bf16.mxu1 %v2514_v53  ;;  %v2550_v53 = vld [vmem:[%s3275_s3 + $0x58] sm:$0xff]  }
 0x178   :  { %855 = vmatpush1.bf16.msra.mxu1 %v2512_v54 }
 0x179   :  { %856 = vmatprep.subr.bf16.mxu1 %v2517_v55 }
 0x17c   :  { %857 = vmatpush1.bf16.msra.mxu1 %v2515_v56  ;;  %v2551_v56 = vld [vmem:[%s3275_s3 + $0x78] sm:$0xff]  }
 0x17d   :  { %895 = vmatprep.subr.bf16.mxu1 %v2520_v57 }
 0x1ce   :  { %v1095_v25 = vpop.permute.xlu1 %1094 }
 0x1d1   :  { %v940_v5 = vpop.permute.xlu0 %939 }
 0x1d5   :  { %v1093_v19 = vpop.permute.xlu0 %1092 }
 0x239   :  { %v622_v59 = vpop.f32.mrb[4].mxu0 }
 0x23a   :  { %v684_v60 = vpop.f32.mrb[0].mxu1  ;;  %v2282_v62 = vpop.f32.mrb[5].mxu0 }
 0x23b   :  { %v685_v61 = vadd.f32 %v684_v60, %v622_v59  ;;  %v2292_v63 = vpop.f32.mrb[1].mxu1  ;;  %v625_v0 = vpop.f32.mrb[6].mxu0  ;;  %v2552_v59 = vld [vmem:[%s3275_s3 + $0x80] sm:$0xff]   ;;  %v2553_v60 = vld [vmem:[%s3275_s3 + $0x88] sm:$0xff]  }
 0x23c   :  { %v687_v1 = vpop.f32.mrb[2].mxu1  ;;  %v2283_v3 = vpop.f32.mrb[7].mxu0 }
 0x23d   :  { %v688_v2 = vadd.f32 %v687_v1, %v625_v0  ;;  %v2293_v4 = vpop.f32.mrb[3].mxu1  ;;  %v2554_v0 = vld [vmem:[%s3277_s5 + $0x60] ss:$16 sps:$4 sm:$0xff]   ;;  %v2556_v1 = vld [vmem:[%s3277_s5 + $0x64] ss:$16 sps:$4 sm:$0xff]  }
 0x23e   :  { %v2557_v3 = vld [vmem:[%s3277_s5 + $0x80] ss:$16 sps:$4 sm:$0xff]   ;;  %v2562_v4 = vld [vmem:[%s3277_s5 + $0xa4] ss:$16 sps:$4 sm:$0xff]  }
 0x246   :  { %v756_v6 = vpop.f32.mrb[4].mxu1 }
 0x247   :  { %v763_v8 = vadd.f32 %v756_v6, %v685_v61  ;;  %v2302_v11 = vpop.f32.mrb[5].mxu1  ;;  %v2563_v6 = vld [vmem:[%s3275_s3 + $0xa8] sm:$0xff]  }
 0x248   :  { %v759_v12 = vpop.f32.mrb[6].mxu1  ;;  %2335 = vmatpush3.bf16.msra.mxu0 %v2563_v6  ;;  %v2571_v11 = vld [vmem:[%s3275_s3 + $0xb8] sm:$0xff]   ;;  %v2589_v6 = vld [vmem:[%s3277_s5 + $0x104] ss:$16 sps:$4 sm:$0xff]  }
 0x249   :  { %v772_v14 = vadd.f32 %v2093_v7, %v763_v8  ;;  %v764_v15 = vadd.f32 %v759_v12, %v688_v2  ;;  %v2303_v16 = vpop.f32.mrb[7].mxu1  ;;  %v2559_v2 = vld [vmem:[%s3277_s5 + $0x84] ss:$16 sps:$4 sm:$0xff]   ;;  %2336 = vmatprep.subr.bf16.mxu0 %v2629_v13 }
 0x24a   :  { %v2567_v8 = vld [vmem:[%s3275_s3 + $0xb0] sm:$0xff]  }
 0x24b   :  { %v774_v17 = vmax.f32 %v772_v14, 0.0  ;;  %v773_v18 = vadd.f32 %v2093_v7, %v764_v15  ;;  %v2566_v7 = vld [vmem:[%s3277_s5 + $0x6c] ss:$16 sps:$4 sm:$0xff]  }
 0x24c   :  { %2337 = vmatpush3.bf16.msra.mxu0 %v2567_v8  ;;  %v2592_v8 = vld [vmem:[%s3277_s5 + $0xcc] ss:$16 sps:$4 sm:$0xff]  }
 0x24d   :  { %v1098_v22 = vadd.f32 %v1093_v19, %v774_v17  ;;  %v775_v24 = vmax.f32 %v773_v18, 0.0  ;;  %2338 = vmatprep.subr.bf16.mxu0 %v2629_v13 }
 0x24f   :  { %1100 = vst.msk [vmem:[#allocation2 + $0x1] sm:$0xff] %vm526_vm0, %v1098_v22  ;;  %v776_v27 = vpack.c.bf16 %v775_v24, %v774_v17  ;;  %v1099_v28 = vadd.f32 %v1095_v25, %v775_v24 }
 0x250   :  { %2339 = vmatpush3.bf16.msra.mxu0 %v2571_v11 }
 0x251   :  { %1101 = vst.msk [vmem:[#allocation2 + $0x11] sm:$0xff] %vm526_vm0, %v1099_v28  ;;  %2106 = vmatmul.mubr.msk.bf16.vlgmr.msra.gmra.mrb[8].mxu1 %vm526_vm0, %v776_v27  ;;  %2344 = vmatprep.subr.bf16.mxu0 %v2629_v13  ;;  %v2153_v28 = vld [vmem:[%s3276_s4 + $0x1] ss:$0 sm:$0xff] }
 0x252   :  { %896 = vmatpush1.bf16.msra.mxu1 %v2518_v26  ;;  %927 = vmatprep.mubr.bf16.mxu1 %v2634_v58  ;;  %v1508_v26 = vpop.permute.xlu0 %1507 }
 0x253   :  { %897 = vmatprep.subr.bf16.mxu1 %v2523_v29  ;;  %v1506_v29 = vpop.permute.xlu1 %1505 }
 0x256   :  { %898 = vmatpush1.bf16.msra.mxu1 %v2521_v30  ;;  %v1112_v49 = vld [vmem:[#allocation2 + $0x1] sm:$0xff] }
 0x257   :  { %899 = vmatprep.subr.bf16.mxu1 %v2526_v31  ;;  %v1102_v55 = vld [vmem:[#allocation2] sm:$0xff] }
 0x258   :  { %v1113_v48 = vld [vmem:[#allocation2 + $0x11] sm:$0xff]  ;;  %v1246_v62 = vld [vmem:[#allocation2 + $0x2] sm:$0xff] }
 0x259   :  { %v1114_v51 = vpack.c.bf16 %v1113_v48, %v1112_v49  ;;  %v1103_v54 = vld [vmem:[#allocation2 + $0x10] sm:$0xff]  ;;  %v2568_v48 = vld [vmem:[%s3277_s5 + $0x88] ss:$16 sps:$4 sm:$0xff]   ;;  %v2574_v49 = vld [vmem:[%s3277_s5 + $0xac] ss:$16 sps:$4 sm:$0xff]  }
 0x25a   :  { %900 = vmatpush1.bf16.msra.mxu1 %v2524_v32  ;;  %v1104_v57 = vpack.c.bf16 %v1103_v54, %v1102_v55  ;;  %v1247_v61 = vld [vmem:[#allocation2 + $0x12] sm:$0xff]  ;;  %v2576_v55 = vld [vmem:[%s3275_s3 + $0xc0] sm:$0xff]  }
 0x25b   :  { %1004 = vmatprep.subr.bf16.mxu1 %v2529_v33  ;;  %v1248_v63 = vpack.c.bf16 %v1247_v61, %v1246_v62 }
 0x25d   :  { %2107 = vmatmul.mubr.msk.bf16.vlgmr.msra.gmra.mrb[12].mxu1 %vm526_vm0, %v776_v27 }
 0x25e   :  { %1005 = vmatpush1.bf16.msra.mxu1 %v2527_v34  ;;  %1036 = vmatprep.mubr.bf16.mxu1 %v2634_v58 }
 0x25f   :  { %1006 = vmatprep.subr.bf16.mxu1 %v2532_v35 }
 0x262   :  { %1007 = vmatpush1.bf16.msra.mxu1 %v2530_v36  ;;  %v1512_v36 = vpop.permute.xlu0 %1511 }
 0x263   :  { %1008 = vmatprep.subr.bf16.mxu1 %v2535_v37 }
 0x266   :  { %1009 = vmatpush1.bf16.msra.mxu1 %v2533_v38 }
 0x267   :  { %1047 = vmatprep.subr.bf16.mxu1 %v2538_v39  ;;  %v1514_v39 = vsel %vm1513_vm3, %v1506_v29, %v1508_v26 }
 0x269   :  { %2120 = vmatmul.mubr.msk.bf16.vlgmr.msra.gmra.mrb[8].mxu1 %vm526_vm0, %v940_v5 }
 0x26a   :  { %1048 = vmatpush1.bf16.msra.mxu1 %v2536_v40  ;;  %1079 = vmatprep.mubr.bf16.mxu1 %v2634_v58  ;;  %v1510_v40 = vpop.permute.xlu1 %1509 }
 0x26b   :  { %1049 = vmatprep.subr.bf16.mxu1 %v2541_v41 }
 0x26e   :  { %1050 = vmatpush1.bf16.msra.mxu1 %v2539_v42 }
 0x26f   :  { %1051 = vmatprep.subr.bf16.mxu1 %v2544_v43  ;;  %v1515_v43 = vsel %vm1513_vm3, %v1510_v40, %v1512_v36  ;;  %v2590_v36 = vld [vmem:[%s3277_s5 + $0xc8] ss:$16 sps:$4 sm:$0xff]   ;;  %v2598_v40 = vld [vmem:[%s3277_s5 + $0x10c] ss:$16 sps:$4 sm:$0xff]  }
 0x272   :  { %1052 = vmatpush1.bf16.msra.mxu1 %v2542_v44  ;;  %v2564_v44 = vld [vmem:[%s3277_s5 + $0x68] ss:$16 sps:$4 sm:$0xff]  }
 0x273   :  { %2304 = vmatprep.subr.bf16.mxu1 %v2629_v13 }
 0x275   :  { %2121 = vmatmul.mubr.msk.bf16.vlgmr.msra.gmra.mrb[12].mxu1 %vm526_vm0, %v940_v5  ;;  %v2560_v5 = vld [vmem:[%s3277_s5 + $0xa0] ss:$16 sps:$4 sm:$0xff]  }
 0x276   :  { %2305 = vmatpush3.bf16.msra.mxu1 %v2545_v45  ;;  %2310 = vmatprep.mubr.msk.bf16.mxu1 %vm2630_vm2, %v2629_v13 }
 0x277   :  { %2306 = vmatprep.subr.bf16.mxu1 %v2629_v13 }
 0x27a   :  { %2307 = vmatpush3.bf16.msra.mxu1 %v2546_v46 }
 0x27b   :  { %2308 = vmatprep.subr.bf16.mxu1 %v2629_v13 }
 0x27e   :  { %2309 = vmatpush3.bf16.msra.mxu1 %v2547_v47  ;;  %v2570_v47 = vld [vmem:[%s3277_s5 + $0x8c] ss:$16 sps:$4 sm:$0xff]  }
 0x27f   :  { %2314 = vmatprep.subr.bf16.mxu1 %v2629_v13 }
 0x281   :  { %2311 = vmatmul.mubr.msk.bf16.vlgmr.msra.gmra.mrb[16].mxu1 %vm526_vm0, %v1114_v51 }
 0x282   :  { %2315 = vmatpush3.bf16.msra.mxu1 %v2548_v50  ;;  %2320 = vmatprep.mubr.msk.bf16.mxu1 %vm2630_vm2, %v2629_v13  ;;  %v2572_v50 = vld [vmem:[%s3277_s5 + $0xa8] ss:$16 sps:$4 sm:$0xff]  }
 0x283   :  { %2316 = vmatprep.subr.bf16.mxu1 %v2629_v13 }
 0x286   :  { %2317 = vmatpush3.bf16.msra.mxu1 %v2549_v52 }
 0x287   :  { %2318 = vmatprep.subr.bf16.mxu1 %v2629_v13 }
 0x28a   :  { %2319 = vmatpush3.bf16.msra.mxu1 %v2550_v53  ;;  %v2575_v53 = vld [vmem:[%s3275_s3 + $0x90] sm:$0xff]  }
 0x28b   :  { %2324 = vmatprep.subr.bf16.mxu1 %v2629_v13 }
 0x28d   :  { %2321 = vmatmul.mubr.msk.bf16.vlgmr.msra.gmra.mrb[20].mxu1 %vm526_vm0, %v1104_v57  ;;  %v2578_v57 = vld [vmem:[%s3275_s3 + $0xc8] sm:$0xff]  }
 0x28e   :  { %2325 = vmatpush3.bf16.msra.mxu1 %v2551_v56  ;;  %2330 = vmatprep.mubr.msk.bf16.mxu1 %vm2630_vm2, %v2629_v13  ;;  %v2577_v56 = vld [vmem:[%s3275_s3 + $0x98] sm:$0xff]  }
 0x28f   :  { %2326 = vmatprep.subr.bf16.mxu1 %v2629_v13 }
 0x292   :  { %2327 = vmatpush3.bf16.msra.mxu1 %v2552_v59  ;;  %v2579_v59 = vld [vmem:[%s3275_s3 + $0xa0] sm:$0xff]  }
 0x293   :  { %2328 = vmatprep.subr.bf16.mxu1 %v2629_v13 }
 0x296   :  { %2329 = vmatpush3.bf16.msra.mxu1 %v2553_v60  ;;  %v2580_v60 = vld [vmem:[%s3275_s3 + $0xd0] sm:$0xff]  }
 0x297   :  { %1409 = vmatprep.subr.bf16.mxu1 %v2556_v1 }
 0x299   :  { %2331 = vmatmul.mubr.msk.bf16.vlgmr.msra.gmra.mrb[24].mxu1 %vm526_vm0, %v1248_v63 }
 0x29a   :  { %1441 = vmatprep.mubr.bf16.mxu1 %v2634_v58  ;;  %1410 = vmatpush1.bf16.msra.mxu1 %v2554_v0 }
 0x29b   :  { %1411 = vmatprep.subr.bf16.mxu1 %v2559_v2 }
 0x29e   :  { %1412 = vmatpush1.bf16.msra.mxu1 %v2557_v3  ;;  %v2583_v3 = vld [vmem:[%s3277_s5 + $0xc4] ss:$16 sps:$4 sm:$0xff]  }
 0x29f   :  { %1413 = vmatprep.subr.bf16.mxu1 %v2562_v4  ;;  %v2586_v4 = vld [vmem:[%s3277_s5 + $0xe4] ss:$16 sps:$4 sm:$0xff]  }
 0x2a2   :  { %1414 = vmatpush1.bf16.msra.mxu1 %v2560_v5  ;;  %v2584_v5 = vld [vmem:[%s3277_s5 + $0xe0] ss:$16 sps:$4 sm:$0xff]  }
 0x2a3   :  { %1452 = vmatprep.subr.bf16.mxu1 %v2566_v7  ;;  %v2587_v7 = vld [vmem:[%s3277_s5 + $0x100] ss:$16 sps:$4 sm:$0xff]  }
 0x354   :  { %v1177_v12 = vpop.f32.mrb[16].mxu1 }
 0x355   :  { %v2312_v14 = vpop.f32.mrb[17].mxu1 }
 0x356   :  { %v1180_v15 = vpop.f32.mrb[18].mxu1 }
 0x357   :  { %v2313_v16 = vpop.f32.mrb[19].mxu1 }
 0x360   :  { %v1239_v17 = vpop.f32.mrb[20].mxu1 }
 0x361   :  { %v1240_v18 = vadd.f32 %v1239_v17, %v1177_v12  ;;  %v2322_v19 = vpop.f32.mrb[21].mxu1 }
 0x362   :  { %v1242_v22 = vpop.f32.mrb[22].mxu1 }
 0x363   :  { %v1243_v24 = vadd.f32 %v1242_v22, %v1180_v15  ;;  %v2323_v25 = vpop.f32.mrb[23].mxu1 }
 0x36c   :  { %v1311_v27 = vpop.f32.mrb[24].mxu1 }
 0x36d   :  { %v1318_v30 = vadd.f32 %v1311_v27, %v1240_v18  ;;  %v2332_v31 = vpop.f32.mrb[25].mxu1 }
 0x36e   :  { %v1314_v32 = vpop.f32.mrb[26].mxu1 }
 0x36f   :  { %v1328_v33 = vadd.f32 %v2153_v28, %v1318_v30  ;;  %v1319_v34 = vadd.f32 %v1314_v32, %v1243_v24  ;;  %v2333_v35 = vpop.f32.mrb[27].mxu1  ;;  %v2211_v24 = vld [vmem:[%s3276_s4 + $0x2] ss:$0 sm:$0xff] }
 0x371   :  { %v1330_v37 = vmax.f32 %v1328_v33, 0.0  ;;  %v1329_v38 = vadd.f32 %v2153_v28, %v1319_v34 }
 0x373   :  { %v1518_v41 = vadd.f32 %v1514_v39, %v1330_v37  ;;  %v1331_v42 = vmax.f32 %v1329_v38, 0.0  ;;  %v2595_v38 = vld [vmem:[%s3277_s5 + $0xec] ss:$16 sps:$4 sm:$0xff]   ;;  %v2593_v39 = vld [vmem:[%s3277_s5 + $0xe8] ss:$16 sps:$4 sm:$0xff]  }
 0x375   :  { %1520 = vst.msk [vmem:[#allocation2 + $0x1] sm:$0xff] %vm526_vm0, %v1518_v41  ;;  %v1332_v45 = vpack.c.bf16 %v1331_v42, %v1330_v37  ;;  %v1519_v46 = vadd.f32 %v1515_v43, %v1331_v42  ;;  %v2596_v41 = vld [vmem:[%s3277_s5 + $0x108] ss:$16 sps:$4 sm:$0xff]   ;;  %v1923_v42 = vld [vmem:[%s3278_s6] sm:$0xf] }
 0x376   :  { %v1932_v43 = vrot.slane %v1923_v42, %v112_v23  ;;  %v2601_v23 = vld [vmem:[%s3272_s0 + $0x20] sm:$0xff] }
 0x377   :  { %1521 = vst.msk [vmem:[#allocation2 + $0x11] sm:$0xff] %vm526_vm0, %v1519_v46  ;;  %2178 = vmatmul.mubr.msk.bf16.vlgmr.msra.gmra.mrb[8].mxu1 %vm526_vm0, %v1332_v45 }
 0x378   :  { %1453 = vmatpush1.bf16.msra.mxu1 %v2564_v44  ;;  %1484 = vmatprep.mubr.bf16.mxu1 %v2634_v58 }
 0x379   :  { %1454 = vmatprep.subr.bf16.mxu1 %v2570_v47 }
 0x37c   :  { %1455 = vmatpush1.bf16.msra.mxu1 %v2568_v48  ;;  %v1532_v51 = vld [vmem:[#allocation2 + $0x1] sm:$0xff] }
 0x37d   :  { %1456 = vmatprep.subr.bf16.mxu1 %v2574_v49  ;;  %v1522_v62 = vld [vmem:[#allocation2] sm:$0xff] }
 0x37e   :  { %v1533_v52 = vld [vmem:[#allocation2 + $0x11] sm:$0xff]  ;;  %v1666_v1 = vld [vmem:[#allocation2 + $0x2] sm:$0xff] }
 0x37f   :  { %v1534_v54 = vpack.c.bf16 %v1533_v52, %v1532_v51  ;;  %v1523_v61 = vld [vmem:[#allocation2 + $0x10] sm:$0xff]  ;;  %v2599_v49 = vld [vmem:[%s3272_s0] sm:$0xff] }
 0x380   :  { %1457 = vmatpush1.bf16.msra.mxu1 %v2572_v50  ;;  %v1667_v63 = vld [vmem:[#allocation2 + $0x12] sm:$0xff]  ;;  %v1524_v0 = vpack.c.bf16 %v1523_v61, %v1522_v62  ;;  %v1939_v62 = vsub.s32 3, %v2935_v20 }
 0x381   :  { %2341 = vmatmul.mubr.msk.bf16.vlgmr.msra.gmra.mrb[8].mxu0 %vm526_vm0, %v1534_v54  ;;  %2354 = vmatprep.subr.bf16.mxu1 %v2629_v13  ;;  %v1668_v2 = vpack.c.bf16 %v1667_v63, %v1666_v1 }
 0x382   :  { %2345 = vmatpush3.bf16.msra.mxu0 %v2575_v53  ;;  %2350 = vmatprep.mubr.msk.bf16.mxu0 %vm2630_vm2, %v2629_v13  ;;  %v2600_v53 = vld [vmem:[%s3272_s0 + $0x8] sm:$0xff] }
 0x383   :  { %2179 = vmatmul.mubr.msk.bf16.vlgmr.msra.gmra.mrb[12].mxu1 %vm526_vm0, %v1332_v45  ;;  %2346 = vmatprep.subr.bf16.mxu0 %v2629_v13 }
 0x384   :  { %2355 = vmatpush3.bf16.msra.mxu1 %v2576_v55  ;;  %2360 = vmatprep.mubr.msk.bf16.mxu1 %vm2630_vm2, %v2629_v13 }
 0x385   :  { %2356 = vmatprep.subr.bf16.mxu1 %v2629_v13 }
 0x386   :  { %2347 = vmatpush3.bf16.msra.mxu0 %v2577_v56 }
 0x387   :  { %2348 = vmatprep.subr.bf16.mxu0 %v2629_v13 }
 0x388   :  { %2357 = vmatpush3.bf16.msra.mxu1 %v2578_v57  ;;  %v1935_v57 = vsub.s32 2, %v2935_v20  ;;  %v2603_v20 = vld [vmem:[%s3272_s0 + $0x18] sm:$0xff] }
 0x389   :  { %2358 = vmatprep.subr.bf16.mxu1 %v2629_v13  ;;  %v2581_v13 = vld [vmem:[%s3277_s5 + $0xc0] ss:$16 sps:$4 sm:$0xff]  }
 0x38a   :  { %2349 = vmatpush3.bf16.msra.mxu0 %v2579_v59  ;;  %v1936_v1 = vrot.slane %v1923_v42, %v1935_v57 }
 0x38c   :  { %2359 = vmatpush3.bf16.msra.mxu1 %v2580_v60  ;;  %v2602_v60 = vld [vmem:[%s3272_s0 + $0x28] sm:$0xff] }
 0x38d   :  { %2351 = vmatmul.mubr.msk.bf16.vlgmr.msra.gmra.mrb[12].mxu0 %vm526_vm0, %v1524_v0  ;;  %1829 = vmatprep.subr.bf16.mxu1 %v2583_v3 }
 0x38f   :  { %2361 = vmatmul.mubr.msk.bf16.vlgmr.msra.gmra.mrb[28].mxu1 %vm526_vm0, %v1668_v2  ;;  %v1940_v2 = vrot.slane %v1923_v42, %v1939_v62 }
 0x390   :  { %1861 = vmatprep.mubr.bf16.mxu1 %v2634_v58  ;;  %1830 = vmatpush1.bf16.msra.mxu1 %v2581_v13 }
 0x391   :  { %1831 = vmatprep.subr.bf16.mxu1 %v2586_v4 }
 0x394   :  { %1832 = vmatpush1.bf16.msra.mxu1 %v2584_v5 }
 0x395   :  { %1833 = vmatprep.subr.bf16.mxu1 %v2589_v6 }
 0x398   :  { %1834 = vmatpush1.bf16.msra.mxu1 %v2587_v7 }
 0x399   :  { %1872 = vmatprep.subr.bf16.mxu1 %v2592_v8 }
 0x454   :  { %v1597_v11 = vpop.f32.mrb[8].mxu0 }
 0x455   :  { %v2342_v12 = vpop.f32.mrb[9].mxu0 }
 0x456   :  { %v1600_v14 = vpop.f32.mrb[10].mxu0 }
 0x457   :  { %v2343_v15 = vpop.f32.mrb[11].mxu0 }
 0x460   :  { %v1659_v16 = vpop.f32.mrb[12].mxu0 }
 0x461   :  { %v1660_v17 = vadd.f32 %v1659_v16, %v1597_v11  ;;  %v2352_v18 = vpop.f32.mrb[13].mxu0 }
 0x462   :  { %v1662_v19 = vpop.f32.mrb[14].mxu0  ;;  %v1731_v22 = vpop.f32.mrb[28].mxu1  ;;  %v2604_v18 = vld [vmem:[%s3272_s0 + $0x38] sm:$0xff] }
 0x463   :  { %v1663_v25 = vadd.f32 %v1662_v19, %v1600_v14  ;;  %v1738_v26 = vadd.f32 %v1731_v22, %v1660_v17  ;;  %v2353_v27 = vpop.f32.mrb[15].mxu0  ;;  %v2362_v28 = vpop.f32.mrb[29].mxu1 }
 0x464   :  { %v1734_v29 = vpop.f32.mrb[30].mxu1 }
 0x465   :  { %v1748_v30 = vadd.f32 %v2211_v24, %v1738_v26  ;;  %v1739_v31 = vadd.f32 %v1734_v29, %v1663_v25  ;;  %v2363_v32 = vpop.f32.mrb[31].mxu1 }
 0x467   :  { %v1749_v33 = vadd.f32 %v2211_v24, %v1739_v31  ;;  %v1750_v34 = vmax.f32 %v1748_v30, 0.0 }
 0x469   :  { %v1751_v35 = vmax.f32 %v1749_v33, 0.0 }
 0x46b   :  { %v1752_v37 = vpack.c.bf16 %v1751_v35, %v1750_v34 }
 0x46d   :  { %2236 = vmatmul.mubr.msk.bf16.vlgmr.msra.gmra.mrb[8].mxu1 %vm526_vm0, %v1752_v37 }
 0x46e   :  { %1873 = vmatpush1.bf16.msra.mxu1 %v2590_v36  ;;  %1904 = vmatprep.mubr.bf16.mxu1 %v2634_v58  ;;  %v1928_v58 = vrot.slane %v1923_v42, %v108_v21 }
 0x46f   :  { %1874 = vmatprep.subr.bf16.mxu1 %v2595_v38 }
 0x472   :  { %1875 = vmatpush1.bf16.msra.mxu1 %v2593_v39 }
 0x473   :  { %1876 = vmatprep.subr.bf16.mxu1 %v2598_v40 }
 0x476   :  { %1877 = vmatpush1.bf16.msra.mxu1 %v2596_v41 }
 0x479   :  { %2237 = vmatmul.mubr.msk.bf16.vlgmr.msra.gmra.mrb[12].mxu1 %vm526_vm0, %v1752_v37 }
 0x540   :  { %v1863_v44 = vpop.f32.mrb[8].mxu1 }
 0x541   :  { %v1945_v45 = vadd.f32 %v1928_v58, %v1863_v44  ;;  %v1865_v46 = vpop.f32.mrb[9].mxu1 }
 0x542   :  { %v1946_v47 = vadd.f32 %v1932_v43, %v1865_v46  ;;  %v1867_v48 = vpop.f32.mrb[10].mxu1 }
 0x543   :  { %v1953_v50 = vadd.f32 %v2599_v49, %v1945_v45  ;;  %v1949_v51 = vadd.f32 %v1928_v58, %v1867_v48  ;;  %v1869_v52 = vpop.f32.mrb[11].mxu1 }
 0x544   :  { %v1954_v21 = vadd.f32 %v2600_v53, %v1946_v47  ;;  %v1950_v54 = vadd.f32 %v1932_v43, %v1869_v52 }
 0x545   :  { %v1961_v55 = vmax.f32 %v1953_v50, 0.0  ;;  %v1957_v56 = vadd.f32 %v2601_v23, %v1949_v51 }
 0x546   :  { %v1962_v59 = vmax.f32 %v1954_v21, 0.0  ;;  %v1958_v61 = vadd.f32 %v2602_v60, %v1950_v54 }
 0x547   :  { %1969 = vst [vmem:[#allocation3] sm:$0xff] %v1961_v55  ;;  %v1965_v63 = vmax.f32 %v1957_v56, 0.0 }
 0x548   :  { %1970 = vst [vmem:[#allocation3 + $0x8] sm:$0xff] %v1962_v59  ;;  %v1966_v0 = vmax.f32 %v1958_v61, 0.0 }
 0x549   :  { %1973 = vst [vmem:[#allocation3 + $0x20] sm:$0xff] %v1965_v63 }
 0x54a   :  { %1974 = vst [vmem:[#allocation3 + $0x28] sm:$0xff] %v1966_v0 }
 0x54c   :  { %v1906_v3 = vpop.f32.mrb[12].mxu1 }
 0x54d   :  { %v1947_v13 = vadd.f32 %v1936_v1, %v1906_v3  ;;  %v1908_v4 = vpop.f32.mrb[13].mxu1 }
 0x54e   :  { %v1948_v5 = vadd.f32 %v1940_v2, %v1908_v4  ;;  %v1910_v6 = vpop.f32.mrb[14].mxu1 }
 0x54f   :  { %v1955_v7 = vadd.f32 %v1947_v13, %v2890_v9  ;;  %v1951_v8 = vadd.f32 %v1936_v1, %v1910_v6  ;;  %v1912_v11 = vpop.f32.mrb[15].mxu1 }
 0x550   :  { %v1956_v12 = vadd.f32 %v2603_v20, %v1948_v5  ;;  %v1952_v14 = vadd.f32 %v1940_v2, %v1912_v11 }
 0x551   :  { %v1963_v15 = vmax.f32 %v1955_v7, 0.0  ;;  %v1959_v16 = vadd.f32 %v1951_v8, %v2895_v10 }
 0x552   :  { %v1964_v17 = vmax.f32 %v1956_v12, 0.0  ;;  %v1960_v19 = vadd.f32 %v2604_v18, %v1952_v14 }
 0x553   :  { %1971 = vst [vmem:[#allocation3 + $0x10] sm:$0xff] %v1963_v15  ;;  %v1967_v9 = vmax.f32 %v1959_v16, 0.0 }
 0x554   :  { %1972 = vst [vmem:[#allocation3 + $0x18] sm:$0xff] %v1964_v17  ;;  %v1968_v22 = vmax.f32 %v1960_v19, 0.0 }
 0x555   :  { %1975 = vst [vmem:[#allocation3 + $0x30] sm:$0xff] %v1967_v9 }
 0x556   :  { %1976 = vst [vmem:[#allocation3 + $0x38] sm:$0xff] %v1968_v22 }
 0x557   :  { %2616 = shalt.err (!%p2613_p4)
}
 0x558   :  { %s2617_s12 = scalar_lea.hbm %s3279_s7, 1024 }
 0x559   :  { %p2618_p5 = scmp.ne.s32.totalorder %s3279_s7, %s2617_s12  ;;  %p2621_p6 = scmp.lt.u32.totalorder %s2617_s12, %s3279_s7 }
 0x55b   :  { %p2623_p7 = pnand %p2621_p6, %p2618_p5 }
 0x55d   :  { %2626 = shalt.err (!%p2623_p7)
}
 0x55e   :  { %s2636_s15 = smov 512  }
 0x55f   :  { %1988 = dma.vmem_to_hbm [thread:$0]  %s1983_s30, 1024, %s3279_s7, [#allocation4], %s2636_s15, %s2636_s15, %s2633_s21  }
 0x560   :  { %2627 = dma.done.wait [#allocation4], 1024  }
 0x561   :  { %2628 = vsyncadd [#allocation4], 4294966272 }
 0x562   :  { %1992 = vsyncpa [#allocation4], 1 }

</bundles_post_ra>
